<compile_context>
chip_gen: v5e
topology: v5e:2x2
jax: 0.10.0
libtpu: 0.0.40
codegen_flags: <defaults>
</compile_context>

<pallas_src>
import jax
import jax.numpy as jnp
from jax.experimental import pallas as pl
from jax.experimental.pallas import tpu as pltpu

H = 8        # GRU hidden size
IN_ENC = 7   # encoder input features
IN_DEC = 6   # decoder input features
OUT_F = 6    # output features of the final Linear(8, 6)
GP = 128     # gate-block lane pad: [r|z] in lanes 0:16 of block 0, n at lane offset GP
SUBLANES = 8  # sublane group height — batch is padded up to a multiple of this


def wheat_gru_kernel(enc_x_ref, dec_x_ref, h0_ref,
                     wih_e_ref, whh_e_ref, bi_e_ref, bhn_e_ref,
                     wih_d_ref, whh_d_ref, bi_d_ref, bhn_d_ref,
                     w_out_ref, b_out_ref,
                     out_ref):
    BP = h0_ref.shape[0]                 # padded batch (multiple of 8 sublanes)
    T_enc = enc_x_ref.shape[0] // BP
    T_dec = dec_x_ref.shape[0] // BP

    # ---- Hoisted, non-recurrent input projections: one fused MXU dot per GRU ----
    # gi = X @ [W_ir | W_iz | 0... | W_in | 0...] + [b_ir+b_hr | b_iz+b_hz | 0... | b_in | 0...]
    gi_e = jnp.dot(enc_x_ref[...], wih_e_ref[...],
                   preferred_element_type=jnp.float32) + bi_e_ref[...]      # (T_enc*BP, 2*GP)
    gi_d = jnp.dot(dec_x_ref[...], wih_d_ref[...],
                   preferred_element_type=jnp.float32) + bi_d_ref[...]      # (T_dec*BP, 2*GP)

    # Hoisted lane slices (all at vreg-aligned offsets 0 and GP).
    gi_e_rz, gi_e_n = gi_e[:, 0:2 * H], gi_e[:, GP:GP + H]
    gi_d_rz, gi_d_n = gi_d[:, 0:2 * H], gi_d[:, GP:GP + H]

    whh_e = whh_e_ref[...]                                                  # (H, 2*GP)
    whh_d = whh_d_ref[...]
    # Hoist bias broadcasts out of the loops (JAX does not CSE broadcast_in_dim).
    bhn_e = jnp.broadcast_to(bhn_e_ref[...], (BP, H))                       # b_hn (encoder)
    bhn_d = jnp.broadcast_to(bhn_d_ref[...], (BP, H))                       # b_hn (decoder)

    def gru_step(gi_rz, gi_n, h, whh, bhn):
        # Single recurrent MXU dot; result blocks are vreg-aligned.
        gh = jnp.dot(h, whh, preferred_element_type=jnp.float32)           # (BP, 2*GP)
        # r and z share contiguous lanes 0:2H -> one fused EUP sigmoid push.
        rz = jax.nn.sigmoid(gi_rz + gh[:, 0:2 * H])
        r = rz[:, 0:H]                      # lane offset 0: no rotate, feeds the tanh chain
        z = rz[:, H:2 * H]                  # rotate by 8 lanes, but off the critical path
        # n-gate block starts at lane offset GP (vreg boundary): no rotate on the path.
        n = jnp.tanh(gi_n + r * (gh[:, GP:GP + H] + bhn))
        return n + z * (h - n)              # == (1-z)*n + z*h

    # ---- Encoder GRU: fully unrolled (static trip count); only final h is needed ----
    h = h0_ref[...]
    for t in range(T_enc):
        s = slice(t * BP, (t + 1) * BP)     # whole-vreg sublane slab (BP == 8)
        h = gru_step(gi_e_rz[s], gi_e_n[s], h, whh_e, bhn_e)

    # ---- Decoder GRU: fully unrolled; hidden states kept live as values (no VMEM scratch) ----
    hs = []
    for t in range(T_dec):
        s = slice(t * BP, (t + 1) * BP)
        h = gru_step(gi_d_rz[s], gi_d_n[s], h, whh_d, bhn_d)
        hs.append(h)

    # ---- ReLU + Linear(8, 6): one batched matmul and a single store ----
    h_all = jnp.maximum(jnp.concatenate(hs, axis=0), 0.0)                   # (T_dec*BP, H)
    y = jnp.dot(h_all, w_out_ref[...],
                preferred_element_type=jnp.float32) + b_out_ref[...]
    out_ref[...] = y.astype(out_ref.dtype)


def fuse_params(p):
    """Per-gate torch-layout params -> gate-fused, lane-padded kernel layout.

    Done ONCE outside the jitted forward so it adds no per-call HLO.
    NOTE: real torch.nn.GRU checkpoints store weight_ih_l0/weight_hh_l0 as (3H, F)/(3H, H);
    loading them requires a transpose + (r,z,n) split into this per-gate layout first.
    """
    def fuse(wih, whh, bih, bhh, f_in):
        wih_f = jnp.zeros((f_in, 2 * GP), jnp.float32)
        wih_f = wih_f.at[:, 0:H].set(wih[0]) \
                     .at[:, H:2 * H].set(wih[1]) \
                     .at[:, GP:GP + H].set(wih[2])
        whh_f = jnp.zeros((H, 2 * GP), jnp.float32)
        whh_f = whh_f.at[:, 0:H].set(whh[0]) \
                     .at[:, H:2 * H].set(whh[1]) \
                     .at[:, GP:GP + H].set(whh[2])
        # r/z input+hidden biases combined; n keeps only b_in here (b_hn stays inside r*(...)).
        bi_f = jnp.zeros((1, 2 * GP), jnp.float32)
        bi_f = bi_f.at[:, 0:H].set(bih[0] + bhh[0]) \
                   .at[:, H:2 * H].set(bih[1] + bhh[1]) \
                   .at[:, GP:GP + H].set(bih[2])
        bhn = bhh[2].astype(jnp.float32)                                    # (1, H)
        return wih_f, whh_f, bi_f, bhn

    wih_e, whh_e, bi_e, bhn_e = fuse(p["wih_e"], p["whh_e"], p["bih_e"], p["bhh_e"], IN_ENC)
    wih_d, whh_d, bi_d, bhn_d = fuse(p["wih_d"], p["whh_d"], p["bih_d"], p["bhh_d"], IN_DEC)
    return (wih_e, whh_e, bi_e, bhn_e,
            wih_d, whh_d, bi_d, bhn_d,
            p["w_out"].astype(jnp.float32), p["b_out"].astype(jnp.float32))


@jax.jit
def wheat_gru_forward(fused, inputs, inputs_, h0):
    """fused: fuse_params(...) output; inputs: (B,T_enc,7), inputs_: (B,T_dec,6), h0: (B,8)."""
    B, T_enc, _ = inputs.shape
    _, T_dec, _ = inputs_.shape
    BP = ((B + SUBLANES - 1) // SUBLANES) * SUBLANES   # pad batch to a full sublane group

    # time-major, batch zero-padded to BP, flattened so each time step is a whole-vreg slab
    enc_x = jnp.pad(jnp.transpose(inputs, (1, 0, 2)).astype(jnp.float32),
                    ((0, 0), (0, BP - B), (0, 0))).reshape(T_enc * BP, IN_ENC)
    dec_x = jnp.pad(jnp.transpose(inputs_, (1, 0, 2)).astype(jnp.float32),
                    ((0, 0), (0, BP - B), (0, 0))).reshape(T_dec * BP, IN_DEC)
    h0p = jnp.pad(h0.astype(jnp.float32), ((0, BP - B), (0, 0)))

    args = (enc_x, dec_x, h0p, *fused)
    vmem = pl.BlockSpec(memory_space=pltpu.MemorySpace.VMEM)
    out_flat = pl.pallas_call(
        wheat_gru_kernel,
        out_shape=jax.ShapeDtypeStruct((T_dec * BP, OUT_F), jnp.float32),
        in_specs=[vmem] * len(args),
        out_specs=vmem,
    )(*args)
    # un-pad + back to batch-first (B, T_dec, 6)
    out = out_flat.reshape(T_dec, BP, OUT_F)[:, :B, :]
    return jnp.transpose(out, (1, 0, 2))


# ------------------------- pure-JAX reference (verification) -------------------------

def _gru_step_ref(x_t, h, wih, whh, bih, bhh):
    """One torch.nn.GRU cell step on per-gate params (r, z, n gate order)."""
    gi_r = x_t @ wih[0] + bih[0]
    gi_z = x_t @ wih[1] + bih[1]
    gi_n = x_t @ wih[2] + bih[2]
    gh_r = h @ whh[0] + bhh[0]
    gh_z = h @ whh[1] + bhh[1]
    gh_n = h @ whh[2] + bhh[2]
    r = jax.nn.sigmoid(gi_r + gh_r)
    z = jax.nn.sigmoid(gi_z + gh_z)
    n = jnp.tanh(gi_n + r * gh_n)
    return (1.0 - z) * n + z * h


def reference_forward(params, inputs, inputs_, h0):
    h = h0
    for t in range(inputs.shape[1]):
        h = _gru_step_ref(inputs[:, t, :], h,
                          params["wih_e"], params["whh_e"], params["bih_e"], params["bhh_e"])
    outs = []
    for t in range(inputs_.shape[1]):
        h = _gru_step_ref(inputs_[:, t, :], h,
                          params["wih_d"], params["whh_d"], params["bih_d"], params["bhh_d"])
        outs.append(jnp.maximum(h, 0.0) @ params["w_out"] + params["b_out"])
    return jnp.stack(outs, axis=1)


def init_params(key):
    """Same distributions as the PyTorch defaults: U(-1/sqrt(H), 1/sqrt(H))."""
    keys = jax.random.split(key, 10)
    k = 1.0 / float(jnp.sqrt(H))

    def u(kk, shape, bound):
        return jax.random.uniform(kk, shape, jnp.float32, -bound, bound)

    return dict(
        wih_e=u(keys[0], (3, IN_ENC, H), k),
        whh_e=u(keys[1], (3, H, H), k),
        bih_e=u(keys[2], (3, 1, H), k),
        bhh_e=u(keys[3], (3, 1, H), k),
        wih_d=u(keys[4], (3, IN_DEC, H), k),
        whh_d=u(keys[5], (3, H, H), k),
        bih_d=u(keys[6], (3, 1, H), k),
        bhh_d=u(keys[7], (3, 1, H), k),
        w_out=u(keys[8], (H, OUT_F), k),   # Linear(8, 6): bound = 1/sqrt(in_features=8)
        b_out=u(keys[9], (1, OUT_F), k),
    )


if __name__ == "__main__":
    key = jax.random.PRNGKey(0)
    k_params, k_in, k_in2, k_h0 = jax.random.split(key, 4)

    B, T_ENC, T_DEC = 2, 8, 8
    params = init_params(k_params)
    inputs = jax.random.normal(k_in, (B, T_ENC, IN_ENC), jnp.float32)
    inputs_ = jax.random.normal(k_in2, (B, T_DEC, IN_DEC), jnp.float32)
    # torch.randn(1, B, 8) initial hidden state -> generated deterministically here
    # (leading num_layers axis already squeezed to (B, 8)).
    h0 = jax.random.normal(k_h0, (B, H), jnp.float32)

    fused = fuse_params(params)            # one-time weight fusion/padding (outside jit)
    out = jax.block_until_ready(wheat_gru_forward(fused, inputs, inputs_, h0))
    ref = reference_forward(params, inputs, inputs_, h0)

    assert out.shape == (B, T_DEC, OUT_F), out.shape
    assert jnp.allclose(out, ref, atol=2e-3, rtol=2e-3), float(jnp.max(jnp.abs(out - ref)))
    print("KERNEL_OK")
</pallas_src>

<mosaic_0001>
module attributes {stable_mosaic.version = 11 : i64} {
  func.func @wheat_gru_kernel(%arg0: memref<64x7xf32, #tpu.memory_space<vmem>>, %arg1: memref<64x6xf32, #tpu.memory_space<vmem>>, %arg2: memref<8x8xf32, #tpu.memory_space<vmem>>, %arg3: memref<7x256xf32, #tpu.memory_space<vmem>>, %arg4: memref<8x256xf32, #tpu.memory_space<vmem>>, %arg5: memref<1x256xf32, #tpu.memory_space<vmem>>, %arg6: memref<1x8xf32, #tpu.memory_space<vmem>>, %arg7: memref<6x256xf32, #tpu.memory_space<vmem>>, %arg8: memref<8x256xf32, #tpu.memory_space<vmem>>, %arg9: memref<1x256xf32, #tpu.memory_space<vmem>>, %arg10: memref<1x8xf32, #tpu.memory_space<vmem>>, %arg11: memref<8x6xf32, #tpu.memory_space<vmem>>, %arg12: memref<1x6xf32, #tpu.memory_space<vmem>>, %arg13: memref<64x6xf32, #tpu.memory_space<vmem>>) attributes {dimension_semantics = [], scalar_prefetch = 0 : i64, scratch_operands = 0 : i64, tpu.core_type = #tpu.core_type<tc>} {
    %c0 = arith.constant 0 : index
    %c0_0 = arith.constant 0 : index
    %0 = vector.load %arg0[%c0, %c0_0] : memref<64x7xf32, #tpu.memory_space<vmem>>, vector<64x7xf32>
    %c0_1 = arith.constant 0 : index
    %c0_2 = arith.constant 0 : index
    %1 = vector.load %arg3[%c0_1, %c0_2] : memref<7x256xf32, #tpu.memory_space<vmem>>, vector<7x256xf32>
    %cst = arith.constant dense<0.000000e+00> : vector<64x256xf32>
    %2 = tpu.matmul %0, %1, %cst {dimension_numbers = #tpu.dot_dimension_numbers<[1], [0], [0], [1], [0, 0, 1, 1], [], []>} : vector<64x7xf32>, vector<7x256xf32>, vector<64x256xf32> -> vector<64x256xf32>
    %c0_3 = arith.constant 0 : index
    %c0_4 = arith.constant 0 : index
    %3 = vector.load %arg5[%c0_3, %c0_4] : memref<1x256xf32, #tpu.memory_space<vmem>>, vector<1x256xf32>
    %4 = vector.broadcast %3 : vector<1x256xf32> to vector<64x256xf32>
    %5 = arith.addf %2, %4 : vector<64x256xf32>
    %c0_5 = arith.constant 0 : index
    %c0_6 = arith.constant 0 : index
    %6 = vector.load %arg1[%c0_5, %c0_6] : memref<64x6xf32, #tpu.memory_space<vmem>>, vector<64x6xf32>
    %c0_7 = arith.constant 0 : index
    %c0_8 = arith.constant 0 : index
    %7 = vector.load %arg7[%c0_7, %c0_8] : memref<6x256xf32, #tpu.memory_space<vmem>>, vector<6x256xf32>
    %cst_9 = arith.constant dense<0.000000e+00> : vector<64x256xf32>
    %8 = tpu.matmul %6, %7, %cst_9 {dimension_numbers = #tpu.dot_dimension_numbers<[1], [0], [0], [1], [0, 0, 1, 1], [], []>} : vector<64x6xf32>, vector<6x256xf32>, vector<64x256xf32> -> vector<64x256xf32>
    %c0_10 = arith.constant 0 : index
    %c0_11 = arith.constant 0 : index
    %9 = vector.load %arg9[%c0_10, %c0_11] : memref<1x256xf32, #tpu.memory_space<vmem>>, vector<1x256xf32>
    %10 = vector.broadcast %9 : vector<1x256xf32> to vector<64x256xf32>
    %11 = arith.addf %8, %10 : vector<64x256xf32>
    %12 = vector.extract_strided_slice %5 {offsets = [0, 0], sizes = [64, 16], strides = [1, 1]} : vector<64x256xf32> to vector<64x16xf32>
    %13 = vector.extract_strided_slice %5 {offsets = [0, 128], sizes = [64, 8], strides = [1, 1]} : vector<64x256xf32> to vector<64x8xf32>
    %14 = vector.extract_strided_slice %11 {offsets = [0, 0], sizes = [64, 16], strides = [1, 1]} : vector<64x256xf32> to vector<64x16xf32>
    %15 = vector.extract_strided_slice %11 {offsets = [0, 128], sizes = [64, 8], strides = [1, 1]} : vector<64x256xf32> to vector<64x8xf32>
    %c0_12 = arith.constant 0 : index
    %c0_13 = arith.constant 0 : index
    %16 = vector.load %arg4[%c0_12, %c0_13] : memref<8x256xf32, #tpu.memory_space<vmem>>, vector<8x256xf32>
    %c0_14 = arith.constant 0 : index
    %c0_15 = arith.constant 0 : index
    %17 = vector.load %arg8[%c0_14, %c0_15] : memref<8x256xf32, #tpu.memory_space<vmem>>, vector<8x256xf32>
    %c0_16 = arith.constant 0 : index
    %c0_17 = arith.constant 0 : index
    %18 = vector.load %arg6[%c0_16, %c0_17] : memref<1x8xf32, #tpu.memory_space<vmem>>, vector<1x8xf32>
    %19 = vector.shape_cast %18 : vector<1x8xf32> to vector<1x8xf32>
    %20 = vector.broadcast %19 : vector<1x8xf32> to vector<8x8xf32>
    %c0_18 = arith.constant 0 : index
    %c0_19 = arith.constant 0 : index
    %21 = vector.load %arg10[%c0_18, %c0_19] : memref<1x8xf32, #tpu.memory_space<vmem>>, vector<1x8xf32>
    %22 = vector.shape_cast %21 : vector<1x8xf32> to vector<1x8xf32>
    %23 = vector.broadcast %22 : vector<1x8xf32> to vector<8x8xf32>
    %c0_20 = arith.constant 0 : index
    %c0_21 = arith.constant 0 : index
    %24 = vector.load %arg2[%c0_20, %c0_21] : memref<8x8xf32, #tpu.memory_space<vmem>>, vector<8x8xf32>
    %25 = vector.extract_strided_slice %12 {offsets = [0, 0], sizes = [8, 16], strides = [1, 1]} : vector<64x16xf32> to vector<8x16xf32>
    %26 = vector.extract_strided_slice %13 {offsets = [0, 0], sizes = [8, 8], strides = [1, 1]} : vector<64x8xf32> to vector<8x8xf32>
    %cst_22 = arith.constant dense<0.000000e+00> : vector<8x256xf32>
    %27 = tpu.matmul %24, %16, %cst_22 {dimension_numbers = #tpu.dot_dimension_numbers<[1], [0], [0], [1], [0, 0, 1, 1], [], []>} : vector<8x8xf32>, vector<8x256xf32>, vector<8x256xf32> -> vector<8x256xf32>
    %28 = vector.extract_strided_slice %27 {offsets = [0, 0], sizes = [8, 16], strides = [1, 1]} : vector<8x256xf32> to vector<8x16xf32>
    %29 = arith.addf %25, %28 : vector<8x16xf32>
    %30 = arith.negf %29 : vector<8x16xf32>
    %31 = math.exp %30 : vector<8x16xf32>
    %cst_23 = arith.constant 1.000000e+00 : f32
    %32 = vector.broadcast %cst_23 : f32 to vector<8x16xf32>
    %33 = arith.addf %32, %31 : vector<8x16xf32>
    %34 = arith.divf %32, %33 : vector<8x16xf32>
    %35 = vector.extract_strided_slice %34 {offsets = [0, 0], sizes = [8, 8], strides = [1, 1]} : vector<8x16xf32> to vector<8x8xf32>
    %36 = vector.extract_strided_slice %34 {offsets = [0, 8], sizes = [8, 8], strides = [1, 1]} : vector<8x16xf32> to vector<8x8xf32>
    %37 = vector.extract_strided_slice %27 {offsets = [0, 128], sizes = [8, 8], strides = [1, 1]} : vector<8x256xf32> to vector<8x8xf32>
    %38 = arith.addf %37, %20 : vector<8x8xf32>
    %39 = arith.mulf %35, %38 : vector<8x8xf32>
    %40 = arith.addf %26, %39 : vector<8x8xf32>
    %41 = math.tanh %40 : vector<8x8xf32>
    %42 = arith.subf %24, %41 : vector<8x8xf32>
    %43 = arith.mulf %36, %42 : vector<8x8xf32>
    %44 = arith.addf %41, %43 : vector<8x8xf32>
    %45 = vector.extract_strided_slice %12 {offsets = [8, 0], sizes = [8, 16], strides = [1, 1]} : vector<64x16xf32> to vector<8x16xf32>
    %46 = vector.extract_strided_slice %13 {offsets = [8, 0], sizes = [8, 8], strides = [1, 1]} : vector<64x8xf32> to vector<8x8xf32>
    %cst_24 = arith.constant dense<0.000000e+00> : vector<8x256xf32>
    %47 = tpu.matmul %44, %16, %cst_24 {dimension_numbers = #tpu.dot_dimension_numbers<[1], [0], [0], [1], [0, 0, 1, 1], [], []>} : vector<8x8xf32>, vector<8x256xf32>, vector<8x256xf32> -> vector<8x256xf32>
    %48 = vector.extract_strided_slice %47 {offsets = [0, 0], sizes = [8, 16], strides = [1, 1]} : vector<8x256xf32> to vector<8x16xf32>
    %49 = arith.addf %45, %48 : vector<8x16xf32>
    %50 = arith.negf %49 : vector<8x16xf32>
    %51 = math.exp %50 : vector<8x16xf32>
    %cst_25 = arith.constant 1.000000e+00 : f32
    %52 = vector.broadcast %cst_25 : f32 to vector<8x16xf32>
    %53 = arith.addf %52, %51 : vector<8x16xf32>
    %54 = arith.divf %52, %53 : vector<8x16xf32>
    %55 = vector.extract_strided_slice %54 {offsets = [0, 0], sizes = [8, 8], strides = [1, 1]} : vector<8x16xf32> to vector<8x8xf32>
    %56 = vector.extract_strided_slice %54 {offsets = [0, 8], sizes = [8, 8], strides = [1, 1]} : vector<8x16xf32> to vector<8x8xf32>
    %57 = vector.extract_strided_slice %47 {offsets = [0, 128], sizes = [8, 8], strides = [1, 1]} : vector<8x256xf32> to vector<8x8xf32>
    %58 = arith.addf %57, %20 : vector<8x8xf32>
    %59 = arith.mulf %55, %58 : vector<8x8xf32>
    %60 = arith.addf %46, %59 : vector<8x8xf32>
    %61 = math.tanh %60 : vector<8x8xf32>
    %62 = arith.subf %44, %61 : vector<8x8xf32>
    %63 = arith.mulf %56, %62 : vector<8x8xf32>
    %64 = arith.addf %61, %63 : vector<8x8xf32>
    %65 = vector.extract_strided_slice %12 {offsets = [16, 0], sizes = [8, 16], strides = [1, 1]} : vector<64x16xf32> to vector<8x16xf32>
    %66 = vector.extract_strided_slice %13 {offsets = [16, 0], sizes = [8, 8], strides = [1, 1]} : vector<64x8xf32> to vector<8x8xf32>
    %cst_26 = arith.constant dense<0.000000e+00> : vector<8x256xf32>
    %67 = tpu.matmul %64, %16, %cst_26 {dimension_numbers = #tpu.dot_dimension_numbers<[1], [0], [0], [1], [0, 0, 1, 1], [], []>} : vector<8x8xf32>, vector<8x256xf32>, vector<8x256xf32> -> vector<8x256xf32>
    %68 = vector.extract_strided_slice %67 {offsets = [0, 0], sizes = [8, 16], strides = [1, 1]} : vector<8x256xf32> to vector<8x16xf32>
    %69 = arith.addf %65, %68 : vector<8x16xf32>
    %70 = arith.negf %69 : vector<8x16xf32>
    %71 = math.exp %70 : vector<8x16xf32>
    %cst_27 = arith.constant 1.000000e+00 : f32
    %72 = vector.broadcast %cst_27 : f32 to vector<8x16xf32>
    %73 = arith.addf %72, %71 : vector<8x16xf32>
    %74 = arith.divf %72, %73 : vector<8x16xf32>
    %75 = vector.extract_strided_slice %74 {offsets = [0, 0], sizes = [8, 8], strides = [1, 1]} : vector<8x16xf32> to vector<8x8xf32>
    %76 = vector.extract_strided_slice %74 {offsets = [0, 8], sizes = [8, 8], strides = [1, 1]} : vector<8x16xf32> to vector<8x8xf32>
    %77 = vector.extract_strided_slice %67 {offsets = [0, 128], sizes = [8, 8], strides = [1, 1]} : vector<8x256xf32> to vector<8x8xf32>
    %78 = arith.addf %77, %20 : vector<8x8xf32>
    %79 = arith.mulf %75, %78 : vector<8x8xf32>
    %80 = arith.addf %66, %79 : vector<8x8xf32>
    %81 = math.tanh %80 : vector<8x8xf32>
    %82 = arith.subf %64, %81 : vector<8x8xf32>
    %83 = arith.mulf %76, %82 : vector<8x8xf32>
    %84 = arith.addf %81, %83 : vector<8x8xf32>
    %85 = vector.extract_strided_slice %12 {offsets = [24, 0], sizes = [8, 16], strides = [1, 1]} : vector<64x16xf32> to vector<8x16xf32>
    %86 = vector.extract_strided_slice %13 {offsets = [24, 0], sizes = [8, 8], strides = [1, 1]} : vector<64x8xf32> to vector<8x8xf32>
    %cst_28 = arith.constant dense<0.000000e+00> : vector<8x256xf32>
    %87 = tpu.matmul %84, %16, %cst_28 {dimension_numbers = #tpu.dot_dimension_numbers<[1], [0], [0], [1], [0, 0, 1, 1], [], []>} : vector<8x8xf32>, vector<8x256xf32>, vector<8x256xf32> -> vector<8x256xf32>
    %88 = vector.extract_strided_slice %87 {offsets = [0, 0], sizes = [8, 16], strides = [1, 1]} : vector<8x256xf32> to vector<8x16xf32>
    %89 = arith.addf %85, %88 : vector<8x16xf32>
    %90 = arith.negf %89 : vector<8x16xf32>
    %91 = math.exp %90 : vector<8x16xf32>
    %cst_29 = arith.constant 1.000000e+00 : f32
    %92 = vector.broadcast %cst_29 : f32 to vector<8x16xf32>
    %93 = arith.addf %92, %91 : vector<8x16xf32>
    %94 = arith.divf %92, %93 : vector<8x16xf32>
    %95 = vector.extract_strided_slice %94 {offsets = [0, 0], sizes = [8, 8], strides = [1, 1]} : vector<8x16xf32> to vector<8x8xf32>
    %96 = vector.extract_strided_slice %94 {offsets = [0, 8], sizes = [8, 8], strides = [1, 1]} : vector<8x16xf32> to vector<8x8xf32>
    %97 = vector.extract_strided_slice %87 {offsets = [0, 128], sizes = [8, 8], strides = [1, 1]} : vector<8x256xf32> to vector<8x8xf32>
    %98 = arith.addf %97, %20 : vector<8x8xf32>
    %99 = arith.mulf %95, %98 : vector<8x8xf32>
    %100 = arith.addf %86, %99 : vector<8x8xf32>
    %101 = math.tanh %100 : vector<8x8xf32>
    %102 = arith.subf %84, %101 : vector<8x8xf32>
    %103 = arith.mulf %96, %102 : vector<8x8xf32>
    %104 = arith.addf %101, %103 : vector<8x8xf32>
    %105 = vector.extract_strided_slice %12 {offsets = [32, 0], sizes = [8, 16], strides = [1, 1]} : vector<64x16xf32> to vector<8x16xf32>
    %106 = vector.extract_strided_slice %13 {offsets = [32, 0], sizes = [8, 8], strides = [1, 1]} : vector<64x8xf32> to vector<8x8xf32>
    %cst_30 = arith.constant dense<0.000000e+00> : vector<8x256xf32>
    %107 = tpu.matmul %104, %16, %cst_30 {dimension_numbers = #tpu.dot_dimension_numbers<[1], [0], [0], [1], [0, 0, 1, 1], [], []>} : vector<8x8xf32>, vector<8x256xf32>, vector<8x256xf32> -> vector<8x256xf32>
    %108 = vector.extract_strided_slice %107 {offsets = [0, 0], sizes = [8, 16], strides = [1, 1]} : vector<8x256xf32> to vector<8x16xf32>
    %109 = arith.addf %105, %108 : vector<8x16xf32>
    %110 = arith.negf %109 : vector<8x16xf32>
    %111 = math.exp %110 : vector<8x16xf32>
    %cst_31 = arith.constant 1.000000e+00 : f32
    %112 = vector.broadcast %cst_31 : f32 to vector<8x16xf32>
    %113 = arith.addf %112, %111 : vector<8x16xf32>
    %114 = arith.divf %112, %113 : vector<8x16xf32>
    %115 = vector.extract_strided_slice %114 {offsets = [0, 0], sizes = [8, 8], strides = [1, 1]} : vector<8x16xf32> to vector<8x8xf32>
    %116 = vector.extract_strided_slice %114 {offsets = [0, 8], sizes = [8, 8], strides = [1, 1]} : vector<8x16xf32> to vector<8x8xf32>
    %117 = vector.extract_strided_slice %107 {offsets = [0, 128], sizes = [8, 8], strides = [1, 1]} : vector<8x256xf32> to vector<8x8xf32>
    %118 = arith.addf %117, %20 : vector<8x8xf32>
    %119 = arith.mulf %115, %118 : vector<8x8xf32>
    %120 = arith.addf %106, %119 : vector<8x8xf32>
    %121 = math.tanh %120 : vector<8x8xf32>
    %122 = arith.subf %104, %121 : vector<8x8xf32>
    %123 = arith.mulf %116, %122 : vector<8x8xf32>
    %124 = arith.addf %121, %123 : vector<8x8xf32>
    %125 = vector.extract_strided_slice %12 {offsets = [40, 0], sizes = [8, 16], strides = [1, 1]} : vector<64x16xf32> to vector<8x16xf32>
    %126 = vector.extract_strided_slice %13 {offsets = [40, 0], sizes = [8, 8], strides = [1, 1]} : vector<64x8xf32> to vector<8x8xf32>
    %cst_32 = arith.constant dense<0.000000e+00> : vector<8x256xf32>
    %127 = tpu.matmul %124, %16, %cst_32 {dimension_numbers = #tpu.dot_dimension_numbers<[1], [0], [0], [1], [0, 0, 1, 1], [], []>} : vector<8x8xf32>, vector<8x256xf32>, vector<8x256xf32> -> vector<8x256xf32>
    %128 = vector.extract_strided_slice %127 {offsets = [0, 0], sizes = [8, 16], strides = [1, 1]} : vector<8x256xf32> to vector<8x16xf32>
    %129 = arith.addf %125, %128 : vector<8x16xf32>
    %130 = arith.negf %129 : vector<8x16xf32>
    %131 = math.exp %130 : vector<8x16xf32>
    %cst_33 = arith.constant 1.000000e+00 : f32
    %132 = vector.broadcast %cst_33 : f32 to vector<8x16xf32>
    %133 = arith.addf %132, %131 : vector<8x16xf32>
    %134 = arith.divf %132, %133 : vector<8x16xf32>
    %135 = vector.extract_strided_slice %134 {offsets = [0, 0], sizes = [8, 8], strides = [1, 1]} : vector<8x16xf32> to vector<8x8xf32>
    %136 = vector.extract_strided_slice %134 {offsets = [0, 8], sizes = [8, 8], strides = [1, 1]} : vector<8x16xf32> to vector<8x8xf32>
    %137 = vector.extract_strided_slice %127 {offsets = [0, 128], sizes = [8, 8], strides = [1, 1]} : vector<8x256xf32> to vector<8x8xf32>
    %138 = arith.addf %137, %20 : vector<8x8xf32>
    %139 = arith.mulf %135, %138 : vector<8x8xf32>
    %140 = arith.addf %126, %139 : vector<8x8xf32>
    %141 = math.tanh %140 : vector<8x8xf32>
    %142 = arith.subf %124, %141 : vector<8x8xf32>
    %143 = arith.mulf %136, %142 : vector<8x8xf32>
    %144 = arith.addf %141, %143 : vector<8x8xf32>
    %145 = vector.extract_strided_slice %12 {offsets = [48, 0], sizes = [8, 16], strides = [1, 1]} : vector<64x16xf32> to vector<8x16xf32>
    %146 = vector.extract_strided_slice %13 {offsets = [48, 0], sizes = [8, 8], strides = [1, 1]} : vector<64x8xf32> to vector<8x8xf32>
    %cst_34 = arith.constant dense<0.000000e+00> : vector<8x256xf32>
    %147 = tpu.matmul %144, %16, %cst_34 {dimension_numbers = #tpu.dot_dimension_numbers<[1], [0], [0], [1], [0, 0, 1, 1], [], []>} : vector<8x8xf32>, vector<8x256xf32>, vector<8x256xf32> -> vector<8x256xf32>
    %148 = vector.extract_strided_slice %147 {offsets = [0, 0], sizes = [8, 16], strides = [1, 1]} : vector<8x256xf32> to vector<8x16xf32>
    %149 = arith.addf %145, %148 : vector<8x16xf32>
    %150 = arith.negf %149 : vector<8x16xf32>
    %151 = math.exp %150 : vector<8x16xf32>
    %cst_35 = arith.constant 1.000000e+00 : f32
    %152 = vector.broadcast %cst_35 : f32 to vector<8x16xf32>
    %153 = arith.addf %152, %151 : vector<8x16xf32>
    %154 = arith.divf %152, %153 : vector<8x16xf32>
    %155 = vector.extract_strided_slice %154 {offsets = [0, 0], sizes = [8, 8], strides = [1, 1]} : vector<8x16xf32> to vector<8x8xf32>
    %156 = vector.extract_strided_slice %154 {offsets = [0, 8], sizes = [8, 8], strides = [1, 1]} : vector<8x16xf32> to vector<8x8xf32>
    %157 = vector.extract_strided_slice %147 {offsets = [0, 128], sizes = [8, 8], strides = [1, 1]} : vector<8x256xf32> to vector<8x8xf32>
    %158 = arith.addf %157, %20 : vector<8x8xf32>
    %159 = arith.mulf %155, %158 : vector<8x8xf32>
    %160 = arith.addf %146, %159 : vector<8x8xf32>
    %161 = math.tanh %160 : vector<8x8xf32>
    %162 = arith.subf %144, %161 : vector<8x8xf32>
    %163 = arith.mulf %156, %162 : vector<8x8xf32>
    %164 = arith.addf %161, %163 : vector<8x8xf32>
    %165 = vector.extract_strided_slice %12 {offsets = [56, 0], sizes = [8, 16], strides = [1, 1]} : vector<64x16xf32> to vector<8x16xf32>
    %166 = vector.extract_strided_slice %13 {offsets = [56, 0], sizes = [8, 8], strides = [1, 1]} : vector<64x8xf32> to vector<8x8xf32>
    %cst_36 = arith.constant dense<0.000000e+00> : vector<8x256xf32>
    %167 = tpu.matmul %164, %16, %cst_36 {dimension_numbers = #tpu.dot_dimension_numbers<[1], [0], [0], [1], [0, 0, 1, 1], [], []>} : vector<8x8xf32>, vector<8x256xf32>, vector<8x256xf32> -> vector<8x256xf32>
    %168 = vector.extract_strided_slice %167 {offsets = [0, 0], sizes = [8, 16], strides = [1, 1]} : vector<8x256xf32> to vector<8x16xf32>
    %169 = arith.addf %165, %168 : vector<8x16xf32>
    %170 = arith.negf %169 : vector<8x16xf32>
    %171 = math.exp %170 : vector<8x16xf32>
    %cst_37 = arith.constant 1.000000e+00 : f32
    %172 = vector.broadcast %cst_37 : f32 to vector<8x16xf32>
    %173 = arith.addf %172, %171 : vector<8x16xf32>
    %174 = arith.divf %172, %173 : vector<8x16xf32>
    %175 = vector.extract_strided_slice %174 {offsets = [0, 0], sizes = [8, 8], strides = [1, 1]} : vector<8x16xf32> to vector<8x8xf32>
    %176 = vector.extract_strided_slice %174 {offsets = [0, 8], sizes = [8, 8], strides = [1, 1]} : vector<8x16xf32> to vector<8x8xf32>
    %177 = vector.extract_strided_slice %167 {offsets = [0, 128], sizes = [8, 8], strides = [1, 1]} : vector<8x256xf32> to vector<8x8xf32>
    %178 = arith.addf %177, %20 : vector<8x8xf32>
    %179 = arith.mulf %175, %178 : vector<8x8xf32>
    %180 = arith.addf %166, %179 : vector<8x8xf32>
    %181 = math.tanh %180 : vector<8x8xf32>
    %182 = arith.subf %164, %181 : vector<8x8xf32>
    %183 = arith.mulf %176, %182 : vector<8x8xf32>
    %184 = arith.addf %181, %183 : vector<8x8xf32>
    %185 = vector.extract_strided_slice %14 {offsets = [0, 0], sizes = [8, 16], strides = [1, 1]} : vector<64x16xf32> to vector<8x16xf32>
    %186 = vector.extract_strided_slice %15 {offsets = [0, 0], sizes = [8, 8], strides = [1, 1]} : vector<64x8xf32> to vector<8x8xf32>
    %cst_38 = arith.constant dense<0.000000e+00> : vector<8x256xf32>
    %187 = tpu.matmul %184, %17, %cst_38 {dimension_numbers = #tpu.dot_dimension_numbers<[1], [0], [0], [1], [0, 0, 1, 1], [], []>} : vector<8x8xf32>, vector<8x256xf32>, vector<8x256xf32> -> vector<8x256xf32>
    %188 = vector.extract_strided_slice %187 {offsets = [0, 0], sizes = [8, 16], strides = [1, 1]} : vector<8x256xf32> to vector<8x16xf32>
    %189 = arith.addf %185, %188 : vector<8x16xf32>
    %190 = arith.negf %189 : vector<8x16xf32>
    %191 = math.exp %190 : vector<8x16xf32>
    %cst_39 = arith.constant 1.000000e+00 : f32
    %192 = vector.broadcast %cst_39 : f32 to vector<8x16xf32>
    %193 = arith.addf %192, %191 : vector<8x16xf32>
    %194 = arith.divf %192, %193 : vector<8x16xf32>
    %195 = vector.extract_strided_slice %194 {offsets = [0, 0], sizes = [8, 8], strides = [1, 1]} : vector<8x16xf32> to vector<8x8xf32>
    %196 = vector.extract_strided_slice %194 {offsets = [0, 8], sizes = [8, 8], strides = [1, 1]} : vector<8x16xf32> to vector<8x8xf32>
    %197 = vector.extract_strided_slice %187 {offsets = [0, 128], sizes = [8, 8], strides = [1, 1]} : vector<8x256xf32> to vector<8x8xf32>
    %198 = arith.addf %197, %23 : vector<8x8xf32>
    %199 = arith.mulf %195, %198 : vector<8x8xf32>
    %200 = arith.addf %186, %199 : vector<8x8xf32>
    %201 = math.tanh %200 : vector<8x8xf32>
    %202 = arith.subf %184, %201 : vector<8x8xf32>
    %203 = arith.mulf %196, %202 : vector<8x8xf32>
    %204 = arith.addf %201, %203 : vector<8x8xf32>
    %205 = vector.extract_strided_slice %14 {offsets = [8, 0], sizes = [8, 16], strides = [1, 1]} : vector<64x16xf32> to vector<8x16xf32>
    %206 = vector.extract_strided_slice %15 {offsets = [8, 0], sizes = [8, 8], strides = [1, 1]} : vector<64x8xf32> to vector<8x8xf32>
    %cst_40 = arith.constant dense<0.000000e+00> : vector<8x256xf32>
    %207 = tpu.matmul %204, %17, %cst_40 {dimension_numbers = #tpu.dot_dimension_numbers<[1], [0], [0], [1], [0, 0, 1, 1], [], []>} : vector<8x8xf32>, vector<8x256xf32>, vector<8x256xf32> -> vector<8x256xf32>
    %208 = vector.extract_strided_slice %207 {offsets = [0, 0], sizes = [8, 16], strides = [1, 1]} : vector<8x256xf32> to vector<8x16xf32>
    %209 = arith.addf %205, %208 : vector<8x16xf32>
    %210 = arith.negf %209 : vector<8x16xf32>
    %211 = math.exp %210 : vector<8x16xf32>
    %cst_41 = arith.constant 1.000000e+00 : f32
    %212 = vector.broadcast %cst_41 : f32 to vector<8x16xf32>
    %213 = arith.addf %212, %211 : vector<8x16xf32>
    %214 = arith.divf %212, %213 : vector<8x16xf32>
    %215 = vector.extract_strided_slice %214 {offsets = [0, 0], sizes = [8, 8], strides = [1, 1]} : vector<8x16xf32> to vector<8x8xf32>
    %216 = vector.extract_strided_slice %214 {offsets = [0, 8], sizes = [8, 8], strides = [1, 1]} : vector<8x16xf32> to vector<8x8xf32>
    %217 = vector.extract_strided_slice %207 {offsets = [0, 128], sizes = [8, 8], strides = [1, 1]} : vector<8x256xf32> to vector<8x8xf32>
    %218 = arith.addf %217, %23 : vector<8x8xf32>
    %219 = arith.mulf %215, %218 : vector<8x8xf32>
    %220 = arith.addf %206, %219 : vector<8x8xf32>
    %221 = math.tanh %220 : vector<8x8xf32>
    %222 = arith.subf %204, %221 : vector<8x8xf32>
    %223 = arith.mulf %216, %222 : vector<8x8xf32>
    %224 = arith.addf %221, %223 : vector<8x8xf32>
    %225 = vector.extract_strided_slice %14 {offsets = [16, 0], sizes = [8, 16], strides = [1, 1]} : vector<64x16xf32> to vector<8x16xf32>
    %226 = vector.extract_strided_slice %15 {offsets = [16, 0], sizes = [8, 8], strides = [1, 1]} : vector<64x8xf32> to vector<8x8xf32>
    %cst_42 = arith.constant dense<0.000000e+00> : vector<8x256xf32>
    %227 = tpu.matmul %224, %17, %cst_42 {dimension_numbers = #tpu.dot_dimension_numbers<[1], [0], [0], [1], [0, 0, 1, 1], [], []>} : vector<8x8xf32>, vector<8x256xf32>, vector<8x256xf32> -> vector<8x256xf32>
    %228 = vector.extract_strided_slice %227 {offsets = [0, 0], sizes = [8, 16], strides = [1, 1]} : vector<8x256xf32> to vector<8x16xf32>
    %229 = arith.addf %225, %228 : vector<8x16xf32>
    %230 = arith.negf %229 : vector<8x16xf32>
    %231 = math.exp %230 : vector<8x16xf32>
    %cst_43 = arith.constant 1.000000e+00 : f32
    %232 = vector.broadcast %cst_43 : f32 to vector<8x16xf32>
    %233 = arith.addf %232, %231 : vector<8x16xf32>
    %234 = arith.divf %232, %233 : vector<8x16xf32>
    %235 = vector.extract_strided_slice %234 {offsets = [0, 0], sizes = [8, 8], strides = [1, 1]} : vector<8x16xf32> to vector<8x8xf32>
    %236 = vector.extract_strided_slice %234 {offsets = [0, 8], sizes = [8, 8], strides = [1, 1]} : vector<8x16xf32> to vector<8x8xf32>
    %237 = vector.extract_strided_slice %227 {offsets = [0, 128], sizes = [8, 8], strides = [1, 1]} : vector<8x256xf32> to vector<8x8xf32>
    %238 = arith.addf %237, %23 : vector<8x8xf32>
    %239 = arith.mulf %235, %238 : vector<8x8xf32>
    %240 = arith.addf %226, %239 : vector<8x8xf32>
    %241 = math.tanh %240 : vector<8x8xf32>
    %242 = arith.subf %224, %241 : vector<8x8xf32>
    %243 = arith.mulf %236, %242 : vector<8x8xf32>
    %244 = arith.addf %241, %243 : vector<8x8xf32>
    %245 = vector.extract_strided_slice %14 {offsets = [24, 0], sizes = [8, 16], strides = [1, 1]} : vector<64x16xf32> to vector<8x16xf32>
    %246 = vector.extract_strided_slice %15 {offsets = [24, 0], sizes = [8, 8], strides = [1, 1]} : vector<64x8xf32> to vector<8x8xf32>
    %cst_44 = arith.constant dense<0.000000e+00> : vector<8x256xf32>
    %247 = tpu.matmul %244, %17, %cst_44 {dimension_numbers = #tpu.dot_dimension_numbers<[1], [0], [0], [1], [0, 0, 1, 1], [], []>} : vector<8x8xf32>, vector<8x256xf32>, vector<8x256xf32> -> vector<8x256xf32>
    %248 = vector.extract_strided_slice %247 {offsets = [0, 0], sizes = [8, 16], strides = [1, 1]} : vector<8x256xf32> to vector<8x16xf32>
    %249 = arith.addf %245, %248 : vector<8x16xf32>
    %250 = arith.negf %249 : vector<8x16xf32>
    %251 = math.exp %250 : vector<8x16xf32>
    %cst_45 = arith.constant 1.000000e+00 : f32
    %252 = vector.broadcast %cst_45 : f32 to vector<8x16xf32>
    %253 = arith.addf %252, %251 : vector<8x16xf32>
    %254 = arith.divf %252, %253 : vector<8x16xf32>
    %255 = vector.extract_strided_slice %254 {offsets = [0, 0], sizes = [8, 8], strides = [1, 1]} : vector<8x16xf32> to vector<8x8xf32>
    %256 = vector.extract_strided_slice %254 {offsets = [0, 8], sizes = [8, 8], strides = [1, 1]} : vector<8x16xf32> to vector<8x8xf32>
    %257 = vector.extract_strided_slice %247 {offsets = [0, 128], sizes = [8, 8], strides = [1, 1]} : vector<8x256xf32> to vector<8x8xf32>
    %258 = arith.addf %257, %23 : vector<8x8xf32>
    %259 = arith.mulf %255, %258 : vector<8x8xf32>
    %260 = arith.addf %246, %259 : vector<8x8xf32>
    %261 = math.tanh %260 : vector<8x8xf32>
    %262 = arith.subf %244, %261 : vector<8x8xf32>
    %263 = arith.mulf %256, %262 : vector<8x8xf32>
    %264 = arith.addf %261, %263 : vector<8x8xf32>
    %265 = vector.extract_strided_slice %14 {offsets = [32, 0], sizes = [8, 16], strides = [1, 1]} : vector<64x16xf32> to vector<8x16xf32>
    %266 = vector.extract_strided_slice %15 {offsets = [32, 0], sizes = [8, 8], strides = [1, 1]} : vector<64x8xf32> to vector<8x8xf32>
    %cst_46 = arith.constant dense<0.000000e+00> : vector<8x256xf32>
    %267 = tpu.matmul %264, %17, %cst_46 {dimension_numbers = #tpu.dot_dimension_numbers<[1], [0], [0], [1], [0, 0, 1, 1], [], []>} : vector<8x8xf32>, vector<8x256xf32>, vector<8x256xf32> -> vector<8x256xf32>
    %268 = vector.extract_strided_slice %267 {offsets = [0, 0], sizes = [8, 16], strides = [1, 1]} : vector<8x256xf32> to vector<8x16xf32>
    %269 = arith.addf %265, %268 : vector<8x16xf32>
    %270 = arith.negf %269 : vector<8x16xf32>
    %271 = math.exp %270 : vector<8x16xf32>
    %cst_47 = arith.constant 1.000000e+00 : f32
    %272 = vector.broadcast %cst_47 : f32 to vector<8x16xf32>
    %273 = arith.addf %272, %271 : vector<8x16xf32>
    %274 = arith.divf %272, %273 : vector<8x16xf32>
    %275 = vector.extract_strided_slice %274 {offsets = [0, 0], sizes = [8, 8], strides = [1, 1]} : vector<8x16xf32> to vector<8x8xf32>
    %276 = vector.extract_strided_slice %274 {offsets = [0, 8], sizes = [8, 8], strides = [1, 1]} : vector<8x16xf32> to vector<8x8xf32>
    %277 = vector.extract_strided_slice %267 {offsets = [0, 128], sizes = [8, 8], strides = [1, 1]} : vector<8x256xf32> to vector<8x8xf32>
    %278 = arith.addf %277, %23 : vector<8x8xf32>
    %279 = arith.mulf %275, %278 : vector<8x8xf32>
    %280 = arith.addf %266, %279 : vector<8x8xf32>
    %281 = math.tanh %280 : vector<8x8xf32>
    %282 = arith.subf %264, %281 : vector<8x8xf32>
    %283 = arith.mulf %276, %282 : vector<8x8xf32>
    %284 = arith.addf %281, %283 : vector<8x8xf32>
    %285 = vector.extract_strided_slice %14 {offsets = [40, 0], sizes = [8, 16], strides = [1, 1]} : vector<64x16xf32> to vector<8x16xf32>
    %286 = vector.extract_strided_slice %15 {offsets = [40, 0], sizes = [8, 8], strides = [1, 1]} : vector<64x8xf32> to vector<8x8xf32>
    %cst_48 = arith.constant dense<0.000000e+00> : vector<8x256xf32>
    %287 = tpu.matmul %284, %17, %cst_48 {dimension_numbers = #tpu.dot_dimension_numbers<[1], [0], [0], [1], [0, 0, 1, 1], [], []>} : vector<8x8xf32>, vector<8x256xf32>, vector<8x256xf32> -> vector<8x256xf32>
    %288 = vector.extract_strided_slice %287 {offsets = [0, 0], sizes = [8, 16], strides = [1, 1]} : vector<8x256xf32> to vector<8x16xf32>
    %289 = arith.addf %285, %288 : vector<8x16xf32>
    %290 = arith.negf %289 : vector<8x16xf32>
    %291 = math.exp %290 : vector<8x16xf32>
    %cst_49 = arith.constant 1.000000e+00 : f32
    %292 = vector.broadcast %cst_49 : f32 to vector<8x16xf32>
    %293 = arith.addf %292, %291 : vector<8x16xf32>
    %294 = arith.divf %292, %293 : vector<8x16xf32>
    %295 = vector.extract_strided_slice %294 {offsets = [0, 0], sizes = [8, 8], strides = [1, 1]} : vector<8x16xf32> to vector<8x8xf32>
    %296 = vector.extract_strided_slice %294 {offsets = [0, 8], sizes = [8, 8], strides = [1, 1]} : vector<8x16xf32> to vector<8x8xf32>
    %297 = vector.extract_strided_slice %287 {offsets = [0, 128], sizes = [8, 8], strides = [1, 1]} : vector<8x256xf32> to vector<8x8xf32>
    %298 = arith.addf %297, %23 : vector<8x8xf32>
    %299 = arith.mulf %295, %298 : vector<8x8xf32>
    %300 = arith.addf %286, %299 : vector<8x8xf32>
    %301 = math.tanh %300 : vector<8x8xf32>
    %302 = arith.subf %284, %301 : vector<8x8xf32>
    %303 = arith.mulf %296, %302 : vector<8x8xf32>
    %304 = arith.addf %301, %303 : vector<8x8xf32>
    %305 = vector.extract_strided_slice %14 {offsets = [48, 0], sizes = [8, 16], strides = [1, 1]} : vector<64x16xf32> to vector<8x16xf32>
    %306 = vector.extract_strided_slice %15 {offsets = [48, 0], sizes = [8, 8], strides = [1, 1]} : vector<64x8xf32> to vector<8x8xf32>
    %cst_50 = arith.constant dense<0.000000e+00> : vector<8x256xf32>
    %307 = tpu.matmul %304, %17, %cst_50 {dimension_numbers = #tpu.dot_dimension_numbers<[1], [0], [0], [1], [0, 0, 1, 1], [], []>} : vector<8x8xf32>, vector<8x256xf32>, vector<8x256xf32> -> vector<8x256xf32>
    %308 = vector.extract_strided_slice %307 {offsets = [0, 0], sizes = [8, 16], strides = [1, 1]} : vector<8x256xf32> to vector<8x16xf32>
    %309 = arith.addf %305, %308 : vector<8x16xf32>
    %310 = arith.negf %309 : vector<8x16xf32>
    %311 = math.exp %310 : vector<8x16xf32>
    %cst_51 = arith.constant 1.000000e+00 : f32
    %312 = vector.broadcast %cst_51 : f32 to vector<8x16xf32>
    %313 = arith.addf %312, %311 : vector<8x16xf32>
    %314 = arith.divf %312, %313 : vector<8x16xf32>
    %315 = vector.extract_strided_slice %314 {offsets = [0, 0], sizes = [8, 8], strides = [1, 1]} : vector<8x16xf32> to vector<8x8xf32>
    %316 = vector.extract_strided_slice %314 {offsets = [0, 8], sizes = [8, 8], strides = [1, 1]} : vector<8x16xf32> to vector<8x8xf32>
    %317 = vector.extract_strided_slice %307 {offsets = [0, 128], sizes = [8, 8], strides = [1, 1]} : vector<8x256xf32> to vector<8x8xf32>
    %318 = arith.addf %317, %23 : vector<8x8xf32>
    %319 = arith.mulf %315, %318 : vector<8x8xf32>
    %320 = arith.addf %306, %319 : vector<8x8xf32>
    %321 = math.tanh %320 : vector<8x8xf32>
    %322 = arith.subf %304, %321 : vector<8x8xf32>
    %323 = arith.mulf %316, %322 : vector<8x8xf32>
    %324 = arith.addf %321, %323 : vector<8x8xf32>
    %325 = vector.extract_strided_slice %14 {offsets = [56, 0], sizes = [8, 16], strides = [1, 1]} : vector<64x16xf32> to vector<8x16xf32>
    %326 = vector.extract_strided_slice %15 {offsets = [56, 0], sizes = [8, 8], strides = [1, 1]} : vector<64x8xf32> to vector<8x8xf32>
    %cst_52 = arith.constant dense<0.000000e+00> : vector<8x256xf32>
    %327 = tpu.matmul %324, %17, %cst_52 {dimension_numbers = #tpu.dot_dimension_numbers<[1], [0], [0], [1], [0, 0, 1, 1], [], []>} : vector<8x8xf32>, vector<8x256xf32>, vector<8x256xf32> -> vector<8x256xf32>
    %328 = vector.extract_strided_slice %327 {offsets = [0, 0], sizes = [8, 16], strides = [1, 1]} : vector<8x256xf32> to vector<8x16xf32>
    %329 = arith.addf %325, %328 : vector<8x16xf32>
    %330 = arith.negf %329 : vector<8x16xf32>
    %331 = math.exp %330 : vector<8x16xf32>
    %cst_53 = arith.constant 1.000000e+00 : f32
    %332 = vector.broadcast %cst_53 : f32 to vector<8x16xf32>
    %333 = arith.addf %332, %331 : vector<8x16xf32>
    %334 = arith.divf %332, %333 : vector<8x16xf32>
    %335 = vector.extract_strided_slice %334 {offsets = [0, 0], sizes = [8, 8], strides = [1, 1]} : vector<8x16xf32> to vector<8x8xf32>
    %336 = vector.extract_strided_slice %334 {offsets = [0, 8], sizes = [8, 8], strides = [1, 1]} : vector<8x16xf32> to vector<8x8xf32>
    %337 = vector.extract_strided_slice %327 {offsets = [0, 128], sizes = [8, 8], strides = [1, 1]} : vector<8x256xf32> to vector<8x8xf32>
    %338 = arith.addf %337, %23 : vector<8x8xf32>
    %339 = arith.mulf %335, %338 : vector<8x8xf32>
    %340 = arith.addf %326, %339 : vector<8x8xf32>
    %341 = math.tanh %340 : vector<8x8xf32>
    %342 = arith.subf %324, %341 : vector<8x8xf32>
    %343 = arith.mulf %336, %342 : vector<8x8xf32>
    %344 = arith.addf %341, %343 : vector<8x8xf32>
    %345 = tpu.concatenate %204, %224, %244, %264, %284, %304, %324, %344 in 0 : vector<8x8xf32>, vector<8x8xf32>, vector<8x8xf32>, vector<8x8xf32>, vector<8x8xf32>, vector<8x8xf32>, vector<8x8xf32>, vector<8x8xf32> -> vector<64x8xf32>
    %cst_54 = arith.constant 0.000000e+00 : f32
    %346 = vector.broadcast %cst_54 : f32 to vector<64x8xf32>
    %347 = arith.maximumf %345, %346 : vector<64x8xf32>
    %c0_55 = arith.constant 0 : index
    %c0_56 = arith.constant 0 : index
    %348 = vector.load %arg11[%c0_55, %c0_56] : memref<8x6xf32, #tpu.memory_space<vmem>>, vector<8x6xf32>
    %cst_57 = arith.constant dense<0.000000e+00> : vector<64x6xf32>
    %349 = tpu.matmul %347, %348, %cst_57 {dimension_numbers = #tpu.dot_dimension_numbers<[1], [0], [0], [1], [0, 0, 1, 1], [], []>} : vector<64x8xf32>, vector<8x6xf32>, vector<64x6xf32> -> vector<64x6xf32>
    %c0_58 = arith.constant 0 : index
    %c0_59 = arith.constant 0 : index
    %350 = vector.load %arg12[%c0_58, %c0_59] : memref<1x6xf32, #tpu.memory_space<vmem>>, vector<1x6xf32>
    %351 = vector.broadcast %350 : vector<1x6xf32> to vector<64x6xf32>
    %352 = arith.addf %349, %351 : vector<64x6xf32>
    %c0_60 = arith.constant 0 : index
    %c0_61 = arith.constant 0 : index
    %353 = vector.load %arg13[%c0_60, %c0_61] : memref<64x6xf32, #tpu.memory_space<vmem>>, vector<64x6xf32>
    tpu.vector_store %arg13[%c0_60, %c0_61], %352 {strides = array<i32>} : memref<64x6xf32, #tpu.memory_space<vmem>>, vector<64x6xf32>,
    return
  }
}

</mosaic_0001>

<bundles_post_ra>
// kernel: wheat_gru_forward.1
= control target key start
LH: loop header
LB: loop body
LE: loop exit
PB: predicated region body
PF: predicated region fallthrough
CT: control target
= control target key end

     0   :  { %vm85_vm0 = vcmask 1046528   ;;  %vm60_vm1 = vcmask 56320   ;;  %vm317_vm2 = vcmask 64512   ;;  %s1852_s16 = smov 8   ;;  %vm215_vm7 = vcmask 1045504   ;;  %s1853_s27 = smov 120   ;;  %s2377_s3 = inlined_call_operand.vmem [shape: f32[7,256], index: 3, kind: input, shape index: {}]   ;;  %s2378_s0 = inlined_call_operand.vmem [shape: f32[64,7], index: 0, kind: input, shape index: {}]   ;;  %s2379_s4 = inlined_call_operand.vmem [shape: f32[8,256], index: 4, kind: input, shape index: {}]   ;;  %s2380_s2 = inlined_call_operand.vmem [shape: f32[8,8], index: 2, kind: input, shape index: {}]   ;;  %s2381_s6 = inlined_call_operand.vmem [shape: f32[1,8], index: 6, kind: input, shape index: {}]   ;;  %s2382_s5 = inlined_call_operand.vmem [shape: f32[1,256], index: 5, kind: input, shape index: {}]   ;;  %s2383_s7 = inlined_call_operand.vmem [shape: f32[6,256], index: 7, kind: input, shape index: {}]   ;;  %s2384_s1 = inlined_call_operand.vmem [shape: f32[64,6], index: 1, kind: input, shape index: {}]   ;;  %s2385_s9 = inlined_call_operand.vmem [shape: f32[1,256], index: 9, kind: input, shape index: {}]   ;;  %s2386_s8 = inlined_call_operand.vmem [shape: f32[8,256], index: 8, kind: input, shape index: {}]   ;;  %s2387_s10 = inlined_call_operand.vmem [shape: f32[1,8], index: 10, kind: input, shape index: {}]   ;;  %s2388_s11 = inlined_call_operand.vmem [shape: f32[8,6], index: 11, kind: input, shape index: {}]   ;;  %s2389_s12 = inlined_call_operand.vmem [shape: f32[1,6], index: 12, kind: input, shape index: {}]   ;;  %s2390_s13 = inlined_call_operand.vmem [shape: f32[64,6], index: 13, kind: output, shape index: {}]  }
   0x1   :  { %v52_v0 = vld [vmem:[%s2377_s3] sm:$0x7f]  ;;  %v46_v1 = vld [vmem:[%s2378_s0 + $0x10] sm:$0xff]  ;;  %v53_v2 = vld [vmem:[%s2377_s3 + $0x8] sm:$0x7f]  ;;  %vm190_vm8 = vcmask 48128  }
   0x2   :  { %1748 = vmatpush.msk.msra.mxu1 %vm85_vm0, %v52_v0  ;;  %1656 = vmatpush.msk.msra.mxu0 %vm85_vm0, %v52_v0  ;;  %v44_v3 = vld [vmem:[%s2378_s0] sm:$0xff]  ;;  %v1941_v4 = vld [vmem:[%s2379_s4 + $0x8] sm:$0xff]  ;;  %v47_v6 = vld [vmem:[%s2378_s0 + $0x18] sm:$0xff] }
   0x3   :  { %1659 = vmatmul.msk.f32.vlgmr.msra.gmra.mxu1 %vm60_vm1, %v46_v1  ;;  %1657 = vmatmul.msk.f32.vlgmr.msra.gmra.mxu0 %vm60_vm1, %v44_v3  ;;  %v1948_v5 = vld [vmem:[%s2379_s4] sm:$0xff]  ;;  %v45_v7 = vld [vmem:[%s2378_s0 + $0x8] sm:$0xff]  ;;  %v50_v11 = vld [vmem:[%s2378_s0 + $0x30] sm:$0xff] }
   0x4   :  { %1665 = vmatpush.msk.msrb.mxu1 %vm85_vm0, %v53_v2  ;;  %336 = vmatpush.msrb.mxu0 %v1948_v5  ;;  %v48_v8 = vld [vmem:[%s2378_s0 + $0x20] sm:$0xff]  ;;  %v49_v10 = vld [vmem:[%s2378_s0 + $0x28] sm:$0xff]  ;;  %v51_v12 = vld [vmem:[%s2378_s0 + $0x38] sm:$0xff] }
   0x5   :  { %1749 = vmatpush.msk.msra.mxu2 %vm85_vm0, %v52_v0  ;;  %1750 = vmatpush.msk.msra.mxu3 %vm85_vm0, %v52_v0  ;;  %v1971_v9 = vld [vmem:[%s2380_s2] sm:$0xff]  ;;  %v183_v60 = vld [vmem:[%s2383_s7 + $0x8] sm:$0x3f]  ;;  %v176_v63 = vld [vmem:[%s2384_s1 + $0x10] sm:$0xff] }
   0x6   :  { %356 = vmatpush.msra.mxu1 %v1941_v4  ;;  %492 = vmatpush.msra.mxu0 %v1948_v5  ;;  %v54_v18 = vld [vmem:[%s2382_s5] sm:$0x3]  ;;  %v175_v62 = vld [vmem:[%s2384_s1 + $0x8] sm:$0xff]  ;;  %v177_v0 = vld [vmem:[%s2384_s1 + $0x18] sm:$0xff] }
   0x7   :  { %1661 = vmatmul.msk.f32.vlgmr.msra.gmra.mxu2 %vm60_vm1, %v48_v8  ;;  %1663 = vmatmul.msk.f32.vlgmr.msra.gmra.mxu3 %vm60_vm1, %v50_v11  ;;  %v57_v19 = vperm.slane %v54_v18, 1  ;;  %v2011_v22 = vperm.slane %v54_v18, 0  ;;  %v2029_v48 = vld [vmem:[%s2381_s6] ss:$0 sm:$0xff] }
   0x8   :  { %v182_v59 = vld [vmem:[%s2383_s7] sm:$0x3f]  ;;  %1683 = vmatpush.msk.msrb.mxu3 %vm215_vm7, %v183_v60 }
   0x9   :  { %v174_v61 = vld [vmem:[%s2384_s1] sm:$0xff]  ;;  %1674 = vmatpush.msk.msrb.mxu2 %vm215_vm7, %v182_v59 }
   0xa   :  { %434 = vmatpush.msra.mxu3 %v1941_v4  ;;  %v184_v18 = vld [vmem:[%s2385_s9] sm:$0x3] }
   0xb   :  { %1660 = vmatmul.msk.f32.gmra.mxu1 %vm60_vm1, %v47_v6  ;;  %1658 = vmatmul.msk.f32.gmra.mxu0 %vm60_vm1, %v45_v7 }
   0xc   :  { %414 = vmatpush.msra.mxu2 %v1948_v5 }
   0xf   :  { %1662 = vmatmul.msk.f32.gmra.mxu2 %vm60_vm1, %v49_v10  ;;  %1664 = vmatmul.msk.f32.gmra.mxu3 %vm60_vm1, %v51_v12 }
  0x13   :  { %1666 = vmatmul.msk.f32.vlgmr.msrb.gmra.mxu1 %vm60_vm1, %v44_v3  ;;  %1692 = vmatmul.msk.f32.vlgmr.msrb.gmra.mxu0 %vm317_vm2, %v1971_v9  ;;  %v178_v3 = vld [vmem:[%s2384_s1 + $0x20] sm:$0xff] }
  0x14   :  { %512 = vmatpush.msrb.mxu1 %v1941_v4  ;;  %648 = vmatpush.msrb.mxu0 %v1948_v5 }
  0x17   :  { %1675 = vmatmul.msk.f32.vlgmr.msrb.gmra.mxu2 %vm190_vm8, %v174_v61  ;;  %1684 = vmatmul.msk.f32.vlgmr.msrb.gmra.mxu3 %vm190_vm8, %v174_v61 }
  0x18   :  { %570 = vmatpush.msrb.mxu2 %v1948_v5  ;;  %590 = vmatpush.msrb.mxu3 %v1941_v4 }
  0x1b   :  { %1667 = vmatmul.msk.f32.gmra.mxu1 %vm60_vm1, %v45_v7  ;;  %v180_v7 = vld [vmem:[%s2384_s1 + $0x30] sm:$0xff] }
  0x1f   :  { %1676 = vmatmul.msk.f32.gmra.mxu2 %vm190_vm8, %v175_v62  ;;  %1685 = vmatmul.msk.f32.gmra.mxu3 %vm190_vm8, %v175_v62 }
  0x23   :  { %1668 = vmatmul.msk.f32.gmra.mxu1 %vm60_vm1, %v46_v1 }
  0x27   :  { %1677 = vmatmul.msk.f32.gmra.mxu2 %vm190_vm8, %v176_v63  ;;  %1686 = vmatmul.msk.f32.gmra.mxu3 %vm190_vm8, %v176_v63 }
  0x2b   :  { %1669 = vmatmul.msk.f32.gmra.mxu1 %vm60_vm1, %v47_v6  ;;  %v179_v6 = vld [vmem:[%s2384_s1 + $0x28] sm:$0xff] }
  0x2f   :  { %1678 = vmatmul.msk.f32.gmra.mxu2 %vm190_vm8, %v177_v0  ;;  %1687 = vmatmul.msk.f32.gmra.mxu3 %vm190_vm8, %v177_v0 }
  0x33   :  { %1670 = vmatmul.msk.f32.gmra.mxu1 %vm60_vm1, %v48_v8  ;;  %v181_v8 = vld [vmem:[%s2384_s1 + $0x38] sm:$0xff] }
  0x37   :  { %1679 = vmatmul.msk.f32.gmra.mxu2 %vm190_vm8, %v178_v3  ;;  %1688 = vmatmul.msk.f32.gmra.mxu3 %vm190_vm8, %v178_v3 }
  0x3b   :  { %1671 = vmatmul.msk.f32.gmra.mxu1 %vm60_vm1, %v49_v10 }
  0x3f   :  { %1680 = vmatmul.msk.f32.gmra.mxu2 %vm190_vm8, %v179_v6  ;;  %1689 = vmatmul.msk.f32.gmra.mxu3 %vm190_vm8, %v179_v6 }
  0x43   :  { %1672 = vmatmul.msk.f32.gmra.mxu1 %vm60_vm1, %v50_v11 }
  0x47   :  { %1681 = vmatmul.msk.f32.gmra.mxu2 %vm190_vm8, %v180_v7  ;;  %1690 = vmatmul.msk.f32.gmra.mxu3 %vm190_vm8, %v180_v7 }
  0x4b   :  { %1673 = vmatmul.msk.f32.gmra.mxu1 %vm60_vm1, %v51_v12 }
  0x4f   :  { %1682 = vmatmul.msk.f32.gmra.mxu2 %vm190_vm8, %v181_v8  ;;  %1691 = vmatmul.msk.f32.gmra.mxu3 %vm190_vm8, %v181_v8 }
  0x53   :  { %1693 = vmatmul.msk.f32.vlgmr.msra.gmra.mxu1 %vm317_vm2, %v1971_v9 }
  0x54   :  { %668 = vmatpush.msra.mxu1 %v1941_v4 }
  0x80   :  { %v2000_v13 = vpop.f32.mrf.mxu1  ;;  %v109_v15 = vpop.f32.mrf.mxu0 }
  0x81   :  { %v110_v23 = vadd.f32 %v109_v15, %v2011_v22 }
  0x88   :  { %v2002_v14 = vpop.f32.mrf.mxu1  ;;  %v2004_v17 = vpop.f32.mrf.mxu0 }
  0x8a   :  { %v2087_v10 = vpop.f32.mrf.mxu3 }
  0x90   :  { %v150_v16 = vpop.f32.mrf.mxu1  ;;  %v338_v24 = vpop.f32.mrf.mxu0 }
  0x91   :  { %v361_v26 = vadd.f32 %v338_v24, %v110_v23  ;;  %v151_v54 = vadd.f32 %v150_v16, %v57_v19 }
  0x92   :  { %v2091_v12 = vpop.f32.mrf.mxu3 }
  0x93   :  { %v1694_v28 = vmul.f32 -1.442695, %v361_v26 }
  0x95   :  { %1756 = vpow2.f32 %v1694_v28 }
  0x98   :  { %v153_v20 = vpop.f32.mrf.mxu1 }
  0x99   :  { %v2009_v21 = vadd.f32 %v153_v20, %v57_v19  ;;  %v2102_v20 = vperm.slane %v184_v18, 1 }
  0x9a   :  { %v2095_v16 = vpop.f32.mrf.mxu3 }
  0x9b   :  { %v1757_v31 = vpop.eup %1756 }
  0x9c   :  { %v365_v34 = vadd.f32 1.0, %v1757_v31 }
  0x9e   :  { %1758 = vrcp.f32 %v365_v34  ;;  %vm371_vm3 = vweird.f32 %v365_v34  ;;  %v377_v45 = vand.u32 2147483648, %v365_v34  ;;  %v375_v47 = vand.u32 2147483647, %v365_v34 }
  0xa0   :  { %v156_v25 = vpop.f32.mrf.mxu1  ;;  %v378_v49 = vor.u32 1.1754944e-38, %v377_v45  ;;  %vm376_vm6 = vcmp.eq.f32.partialorder %v375_v47, 8.507059e+37 }
  0xa1   :  { %v2014_v27 = vadd.f32 %v156_v25, %v57_v19 }
  0xa2   :  { %v283_v24 = vpop.f32.mrf.mxu3 }
  0xa3   :  { %v2108_v26 = vadd.f32 %v283_v24, %v2102_v20 }
  0xa4   :  { %v1759_v37 = vpop.eup %1758 }
  0xa5   :  { %v367_v38 = vmul.f32 %v1759_v37, %v365_v34  ;;  %vm372_vm4 = vweird.f32 %v1759_v37 }
  0xa6   :  { %vm373_vm5 = vmor %vm371_vm3, %vm372_vm4 }
  0xa7   :  { %v368_v41 = vsub.f32 1.0, %v367_v38 }
  0xa8   :  { %v159_v29 = vpop.f32.mrf.mxu1 }
  0xa9   :  { %v2016_v30 = vadd.f32 %v159_v29, %v57_v19  ;;  %v369_v42 = vmul.f32 %v1759_v37, %v368_v41 }
  0xab   :  { %v370_v46 = vadd.f32 %v1759_v37, %v369_v42 }
  0xad   :  { %v374_v50 = vsel %vm373_vm5, %v1759_v37, %v370_v46 }
  0xae   :  { %v379_v53 = vsel %vm376_vm6, %v378_v49, %v374_v50 }
  0xb0   :  { %v162_v32 = vpop.f32.mrf.mxu1 }
  0xb1   :  { %v2018_v33 = vadd.f32 %v162_v32, %v57_v19  ;;  %v286_v32 = vpop.f32.mrf.mxu3 }
  0xb8   :  { %v165_v35 = vpop.f32.mrf.mxu1 }
  0xb9   :  { %v2020_v36 = vadd.f32 %v165_v35, %v57_v19  ;;  %v2116_v35 = vadd.f32 %v286_v32, %v2102_v20  ;;  %v289_v38 = vpop.f32.mrf.mxu3 }
  0xba   :  { %v2124_v41 = vadd.f32 %v289_v38, %v2102_v20 }
  0xc0   :  { %v168_v39 = vpop.f32.mrf.mxu1 }
  0xc1   :  { %v2022_v40 = vadd.f32 %v168_v39, %v57_v19 }
  0xc8   :  { %v171_v43 = vpop.f32.mrf.mxu1 }
  0xc9   :  { %v2024_v44 = vadd.f32 %v171_v43, %v57_v19  ;;  %v2100_v19 = vperm.slane %v184_v18, 0  ;;  %v292_v43 = vpop.f32.mrf.mxu3 }
  0xca   :  { %v2130_v46 = vadd.f32 %v292_v43, %v2102_v20 }
  0xd0   :  { %v358_v51 = vpop.f32.mrf.mxu1 }
  0xd1   :  { %v381_v52 = vadd.f32 %v2029_v48, %v358_v51  ;;  %v295_v49 = vpop.f32.mrf.mxu3 }
  0xd2   :  { %v2136_v51 = vadd.f32 %v295_v49, %v2102_v20 }
  0xd3   :  { %v382_v55 = vmul.f32 %v381_v52, %v379_v53 }
  0xd5   :  { %v383_v56 = vadd.f32 %v382_v55, %v151_v54 }
  0xd7   :  { %1760 = vtanh.f32 %v383_v56 }
  0xdd   :  { %v1761_v57 = vpop.eup %1760 }
  0xde   :  { %v385_v58 = vsub.f32 %v1971_v9, %v1761_v57  ;;  %v2085_v9 = vpop.f32.mrf.mxu2 }
  0xe0   :  { %387 = vrot.lane.b32.xlu0 %v385_v58, %s1852_s16 }
  0xe6   :  { %v2089_v11 = vpop.f32.mrf.mxu2 }
  0xee   :  { %v2093_v15 = vpop.f32.mrf.mxu2 }
  0xf6   :  { %v242_v23 = vpop.f32.mrf.mxu2 }
  0xf7   :  { %v2105_v25 = vadd.f32 %v242_v23, %v2100_v19 }
  0xfe   :  { %v245_v31 = vpop.f32.mrf.mxu2 }
  0xff   :  { %v2113_v34 = vadd.f32 %v245_v31, %v2100_v19 }
 0x106   :  { %v248_v37 = vpop.f32.mrf.mxu2 }
 0x107   :  { %v2121_v39 = vadd.f32 %v248_v37, %v2100_v19 }
 0x10e   :  { %v251_v42 = vpop.f32.mrf.mxu2 }
 0x10f   :  { %v2127_v45 = vadd.f32 %v251_v42, %v2100_v19 }
 0x116   :  { %v254_v47 = vpop.f32.mrf.mxu2 }
 0x117   :  { %v2133_v50 = vadd.f32 %v254_v47, %v2100_v19 }
 0x11e   :  { %v257_v52 = vpop.f32.mrf.mxu2 }
 0x11f   :  { %v2139_v54 = vadd.f32 %v257_v52, %v2100_v19 }
 0x126   :  { %v2144_v56 = vpop.f32.mrf.mxu2 }
 0x152   :  { %v388_v1 = vpop.permute.xlu0 %387 }
 0x153   :  { %v390_v2 = vmul.f32 %v388_v1, %v379_v53  ;;  %v298_v53 = vpop.f32.mrf.mxu3 }
 0x154   :  { %v2142_v55 = vadd.f32 %v298_v53, %v2102_v20 }
 0x155   :  { %392 = vrot.lane.b32.xlu0 %v390_v2, %s1853_s27 }
 0x15b   :  { %v2148_v63 = vpop.f32.mrf.mxu3 }
 0x1c7   :  { %v393_v28 = vpop.permute.xlu0 %392 }
 0x1c8   :  { %v395_v29 = vadd.f32 %v1761_v57, %v393_v28  ;;  %v113_v57 = vadd.f32 %v2004_v17, %v2011_v22 }
 0x1ca   :  { %1695 = vmatmul.msk.f32.vlgmr.msra.gmra.mxu2 %vm317_vm2, %v395_v29  ;;  %1696 = vmatmul.msk.f32.vlgmr.msra.gmra.mxu3 %vm317_vm2, %v395_v29 }
 0x1cb   :  { %726 = vmatpush.msra.mxu2 %v1948_v5  ;;  %746 = vmatpush.msra.mxu3 %v1941_v4 }
 0x24d   :  { %v416_v58 = vpop.f32.mrf.mxu2  ;;  %v436_v8 = vpop.f32.mrf.mxu3 }
 0x24e   :  { %v439_v59 = vadd.f32 %v416_v58, %v113_v57  ;;  %v459_v24 = vadd.f32 %v2029_v48, %v436_v8 }
 0x250   :  { %v1697_v60 = vmul.f32 -1.442695, %v439_v59 }
 0x252   :  { %1762 = vpow2.f32 %v1697_v60 }
 0x258   :  { %v1763_v61 = vpop.eup %1762 }
 0x259   :  { %v443_v62 = vadd.f32 1.0, %v1763_v61 }
 0x25b   :  { %1764 = vrcp.f32 %v443_v62  ;;  %v455_v3 = vand.u32 2147483648, %v443_v62  ;;  %v453_v7 = vand.u32 2147483647, %v443_v62  ;;  %vm449_vm10 = vweird.f32 %v443_v62 }
 0x25d   :  { %v456_v17 = vor.u32 1.1754944e-38, %v455_v3  ;;  %vm454_vm12 = vcmp.eq.f32.partialorder %v453_v7, 8.507059e+37 }
 0x261   :  { %v1765_v0 = vpop.eup %1764 }
 0x262   :  { %v445_v1 = vmul.f32 %v1765_v0, %v443_v62  ;;  %vm450_vm9 = vweird.f32 %v1765_v0 }
 0x263   :  { %vm451_vm11 = vmor %vm449_vm10, %vm450_vm9 }
 0x264   :  { %v446_v2 = vsub.f32 1.0, %v445_v1 }
 0x266   :  { %v447_v6 = vmul.f32 %v1765_v0, %v446_v2 }
 0x268   :  { %v448_v18 = vadd.f32 %v1765_v0, %v447_v6 }
 0x26a   :  { %v452_v23 = vsel %vm451_vm11, %v1765_v0, %v448_v18 }
 0x26b   :  { %v457_v28 = vsel %vm454_vm12, %v456_v17, %v452_v23 }
 0x26c   :  { %v460_v31 = vmul.f32 %v459_v24, %v457_v28 }
 0x26e   :  { %v461_v32 = vadd.f32 %v460_v31, %v2009_v21  ;;  %v116_v21 = vadd.f32 %v2000_v13, %v2011_v22 }
 0x270   :  { %1766 = vtanh.f32 %v461_v32 }
 0x276   :  { %v1767_v37 = vpop.eup %1766 }
 0x277   :  { %v463_v38 = vsub.f32 %v395_v29, %v1767_v37 }
 0x279   :  { %465 = vrot.lane.b32.xlu1 %v463_v38, %s1852_s16 }
 0x2eb   :  { %v466_v42 = vpop.permute.xlu1 %465 }
 0x2ec   :  { %v468_v43 = vmul.f32 %v466_v42, %v457_v28 }
 0x2ee   :  { %470 = vrot.lane.b32.xlu1 %v468_v43, %s1853_s27 }
 0x360   :  { %v471_v47 = vpop.permute.xlu1 %470 }
 0x361   :  { %v473_v49 = vadd.f32 %v1767_v37, %v471_v47 }
 0x363   :  { %1698 = vmatmul.msk.f32.vlgmr.msra.gmra.mxu0 %vm317_vm2, %v473_v49  ;;  %1699 = vmatmul.msk.f32.vlgmr.msrb.gmra.mxu1 %vm317_vm2, %v473_v49 }
 0x364   :  { %804 = vmatpush.msra.mxu0 %v1948_v5  ;;  %824 = vmatpush.msrb.mxu1 %v1941_v4 }
 0x3e0   :  { %v494_v29 = vpop.f32.mrf.mxu0  ;;  %v514_v2 = vpop.f32.mrf.mxu1 }
 0x3e1   :  { %v517_v52 = vadd.f32 %v494_v29, %v116_v21  ;;  %v537_v7 = vadd.f32 %v2029_v48, %v514_v2 }
 0x3e3   :  { %v1700_v53 = vmul.f32 -1.442695, %v517_v52 }
 0x3e5   :  { %1768 = vpow2.f32 %v1700_v53 }
 0x3eb   :  { %v1769_v57 = vpop.eup %1768 }
 0x3ec   :  { %v521_v58 = vadd.f32 1.0, %v1769_v57 }
 0x3ee   :  { %1770 = vrcp.f32 %v521_v58  ;;  %v533_v62 = vand.u32 2147483648, %v521_v58  ;;  %v531_v1 = vand.u32 2147483647, %v521_v58  ;;  %vm527_vm14 = vweird.f32 %v521_v58 }
 0x3f0   :  { %v534_v6 = vor.u32 1.1754944e-38, %v533_v62  ;;  %vm532_vm0 = vcmp.eq.f32.partialorder %v531_v1, 8.507059e+37 }
 0x3f4   :  { %v1771_v59 = vpop.eup %1770 }
 0x3f5   :  { %v523_v60 = vmul.f32 %v1771_v59, %v521_v58  ;;  %vm528_vm13 = vweird.f32 %v1771_v59 }
 0x3f6   :  { %vm529_vm15 = vmor %vm527_vm14, %vm528_vm13 }
 0x3f7   :  { %v524_v61 = vsub.f32 1.0, %v523_v60 }
 0x3f9   :  { %v525_v0 = vmul.f32 %v1771_v59, %v524_v61 }
 0x3fb   :  { %v526_v3 = vadd.f32 %v1771_v59, %v525_v0 }
 0x3fd   :  { %v530_v13 = vsel %vm529_vm15, %v1771_v59, %v526_v3 }
 0x3fe   :  { %v535_v8 = vsel %vm532_vm0, %v534_v6, %v530_v13 }
 0x3ff   :  { %v538_v18 = vmul.f32 %v537_v7, %v535_v8 }
 0x401   :  { %v539_v17 = vadd.f32 %v538_v18, %v2014_v27  ;;  %v119_v27 = vadd.f32 %v2002_v14, %v2011_v22 }
 0x403   :  { %1772 = vtanh.f32 %v539_v17 }
 0x409   :  { %v1773_v23 = vpop.eup %1772 }
 0x40a   :  { %v541_v24 = vsub.f32 %v473_v49, %v1773_v23 }
 0x40c   :  { %543 = vrot.lane.b32.xlu2 %v541_v24, %s1852_s16 }
 0x466   :  { %v544_v28 = vpop.permute.xlu2 %543 }
 0x467   :  { %v546_v31 = vmul.f32 %v544_v28, %v535_v8  ;;  %v122_v8 = vadd.f32 %v2085_v9, %v2011_v22 }
 0x469   :  { %548 = vrot.lane.b32.xlu2 %v546_v31, %s1853_s27 }
 0x4c3   :  { %v549_v32 = vpop.permute.xlu2 %548 }
 0x4c4   :  { %v551_v37 = vadd.f32 %v1773_v23, %v549_v32 }
 0x4c6   :  { %1701 = vmatmul.msk.f32.vlgmr.msrb.gmra.mxu2 %vm317_vm2, %v551_v37  ;;  %1702 = vmatmul.msk.f32.vlgmr.msrb.gmra.mxu3 %vm317_vm2, %v551_v37 }
 0x4c7   :  { %882 = vmatpush.msrb.mxu2 %v1948_v5  ;;  %902 = vmatpush.msrb.mxu3 %v1941_v4 }
 0x549   :  { %v572_v38 = vpop.f32.mrf.mxu2  ;;  %v592_v5 = vpop.f32.mrf.mxu3 }
 0x54a   :  { %v595_v42 = vadd.f32 %v572_v38, %v119_v27  ;;  %v615_v60 = vadd.f32 %v2029_v48, %v592_v5 }
 0x54c   :  { %v1703_v43 = vmul.f32 -1.442695, %v595_v42 }
 0x54e   :  { %1774 = vpow2.f32 %v1703_v43 }
 0x554   :  { %v1775_v47 = vpop.eup %1774 }
 0x555   :  { %v599_v49 = vadd.f32 1.0, %v1775_v47 }
 0x557   :  { %1776 = vrcp.f32 %v599_v49  ;;  %v611_v53 = vand.u32 2147483648, %v599_v49  ;;  %v609_v58 = vand.u32 2147483647, %v599_v49  ;;  %vm605_vm3 = vweird.f32 %v599_v49 }
 0x559   :  { %v612_v4 = vor.u32 1.1754944e-38, %v611_v53  ;;  %vm610_vm5 = vcmp.eq.f32.partialorder %v609_v58, 8.507059e+37 }
 0x55d   :  { %v1777_v21 = vpop.eup %1776 }
 0x55e   :  { %v601_v29 = vmul.f32 %v1777_v21, %v599_v49  ;;  %vm606_vm1 = vweird.f32 %v1777_v21 }
 0x55f   :  { %vm607_vm4 = vmor %vm605_vm3, %vm606_vm1 }
 0x560   :  { %v602_v52 = vsub.f32 1.0, %v601_v29 }
 0x562   :  { %v603_v57 = vmul.f32 %v1777_v21, %v602_v52 }
 0x564   :  { %v604_v59 = vadd.f32 %v1777_v21, %v603_v57 }
 0x566   :  { %v608_v14 = vsel %vm607_vm4, %v1777_v21, %v604_v59 }
 0x567   :  { %v613_v61 = vsel %vm610_vm5, %v612_v4, %v608_v14  ;;  %v125_v14 = vadd.f32 %v2089_v11, %v2011_v22 }
 0x568   :  { %v616_v62 = vmul.f32 %v615_v60, %v613_v61 }
 0x56a   :  { %v617_v0 = vadd.f32 %v616_v62, %v2016_v30 }
 0x56c   :  { %1778 = vtanh.f32 %v617_v0 }
 0x572   :  { %v1779_v1 = vpop.eup %1778 }
 0x573   :  { %v619_v2 = vsub.f32 %v551_v37, %v1779_v1 }
 0x575   :  { %621 = vrot.lane.b32.xlu0 %v619_v2, %s1852_s16 }
 0x5e7   :  { %v622_v3 = vpop.permute.xlu0 %621 }
 0x5e8   :  { %v624_v6 = vmul.f32 %v622_v3, %v613_v61 }
 0x5ea   :  { %626 = vrot.lane.b32.xlu1 %v624_v6, %s1853_s27 }
 0x65c   :  { %v627_v13 = vpop.permute.xlu1 %626 }
 0x65d   :  { %v629_v7 = vadd.f32 %v1779_v1, %v627_v13 }
 0x65f   :  { %1704 = vmatmul.msk.f32.vlgmr.msrb.gmra.mxu0 %vm317_vm2, %v629_v7  ;;  %1705 = vmatmul.msk.f32.vlgmr.msra.gmra.mxu1 %vm317_vm2, %v629_v7 }
 0x6dc   :  { %v650_v18 = vpop.f32.mrf.mxu0  ;;  %v670_v42 = vpop.f32.mrf.mxu1 }
 0x6dd   :  { %v673_v30 = vadd.f32 %v650_v18, %v122_v8  ;;  %v693_v49 = vadd.f32 %v2029_v48, %v670_v42 }
 0x6df   :  { %v1706_v17 = vmul.f32 -1.442695, %v673_v30 }
 0x6e1   :  { %1780 = vpow2.f32 %v1706_v17 }
 0x6e7   :  { %v1781_v23 = vpop.eup %1780 }
 0x6e8   :  { %v677_v24 = vadd.f32 1.0, %v1781_v23 }
 0x6ea   :  { %1782 = vrcp.f32 %v677_v24  ;;  %v689_v37 = vand.u32 2147483648, %v677_v24  ;;  %v687_v38 = vand.u32 2147483647, %v677_v24  ;;  %vm683_vm7 = vweird.f32 %v677_v24 }
 0x6ec   :  { %v690_v47 = vor.u32 1.1754944e-38, %v689_v37  ;;  %vm688_vm10 = vcmp.eq.f32.partialorder %v687_v38, 8.507059e+37 }
 0x6f0   :  { %v1783_v28 = vpop.eup %1782 }
 0x6f1   :  { %v679_v31 = vmul.f32 %v1783_v28, %v677_v24  ;;  %vm684_vm6 = vweird.f32 %v1783_v28 }
 0x6f2   :  { %vm685_vm9 = vmor %vm683_vm7, %vm684_vm6 }
 0x6f3   :  { %v680_v32 = vsub.f32 1.0, %v679_v31 }
 0x6f5   :  { %v681_v27 = vmul.f32 %v1783_v28, %v680_v32 }
 0x6f7   :  { %v682_v43 = vadd.f32 %v1783_v28, %v681_v27 }
 0x6f9   :  { %v686_v9 = vsel %vm685_vm9, %v1783_v28, %v682_v43  ;;  %v128_v43 = vadd.f32 %v2087_v10, %v2011_v22 }
 0x6fa   :  { %v691_v21 = vsel %vm688_vm10, %v690_v47, %v686_v9 }
 0x6fb   :  { %v694_v29 = vmul.f32 %v693_v49, %v691_v21 }
 0x6fd   :  { %v695_v52 = vadd.f32 %v694_v29, %v2018_v33 }
 0x6ff   :  { %1784 = vtanh.f32 %v695_v52 }
 0x705   :  { %v1785_v53 = vpop.eup %1784 }
 0x706   :  { %v697_v57 = vsub.f32 %v629_v7, %v1785_v53 }
 0x708   :  { %699 = vrot.lane.b32.xlu2 %v697_v57, %s1852_s16 }
 0x762   :  { %v700_v58 = vpop.permute.xlu2 %699 }
 0x763   :  { %v702_v5 = vmul.f32 %v700_v58, %v691_v21 }
 0x765   :  { %704 = vrot.lane.b32.xlu0 %v702_v5, %s1853_s27 }
 0x7d7   :  { %v705_v59 = vpop.permute.xlu0 %704 }
 0x7d8   :  { %v707_v4 = vadd.f32 %v1785_v53, %v705_v59 }
 0x7da   :  { %1707 = vmatmul.msk.f32.vlgmr.msra.gmra.mxu2 %vm317_vm2, %v707_v4  ;;  %1708 = vmatmul.msk.f32.vlgmr.msra.gmra.mxu3 %vm317_vm2, %v707_v4 }
 0x85d   :  { %v728_v60 = vpop.f32.mrf.mxu2  ;;  %v748_v8 = vpop.f32.mrf.mxu3 }
 0x85e   :  { %v751_v33 = vadd.f32 %v728_v60, %v125_v14  ;;  %v771_v17 = vadd.f32 %v2029_v48, %v748_v8 }
 0x860   :  { %v1709_v61 = vmul.f32 -1.442695, %v751_v33 }
 0x862   :  { %1786 = vpow2.f32 %v1709_v61 }
 0x868   :  { %v1787_v62 = vpop.eup %1786 }
 0x869   :  { %v755_v0 = vadd.f32 1.0, %v1787_v62 }
 0x86b   :  { %1788 = vrcp.f32 %v755_v0  ;;  %v767_v6 = vand.u32 2147483648, %v755_v0  ;;  %v765_v7 = vand.u32 2147483647, %v755_v0  ;;  %vm761_vm12 = vweird.f32 %v755_v0 }
 0x86d   :  { %v768_v30 = vor.u32 1.1754944e-38, %v767_v6  ;;  %vm766_vm14 = vcmp.eq.f32.partialorder %v765_v7, 8.507059e+37  ;;  %v131_v7 = vadd.f32 %v2091_v12, %v2011_v22 }
 0x871   :  { %v1789_v1 = vpop.eup %1788 }
 0x872   :  { %v757_v2 = vmul.f32 %v1789_v1, %v755_v0  ;;  %vm762_vm11 = vweird.f32 %v1789_v1 }
 0x873   :  { %vm763_vm13 = vmor %vm761_vm12, %vm762_vm11 }
 0x874   :  { %v758_v3 = vsub.f32 1.0, %v757_v2 }
 0x876   :  { %v759_v13 = vmul.f32 %v1789_v1, %v758_v3 }
 0x878   :  { %v760_v18 = vadd.f32 %v1789_v1, %v759_v13 }
 0x87a   :  { %v764_v11 = vsel %vm763_vm13, %v1789_v1, %v760_v18 }
 0x87b   :  { %v769_v23 = vsel %vm766_vm14, %v768_v30, %v764_v11 }
 0x87c   :  { %v772_v24 = vmul.f32 %v771_v17, %v769_v23 }
 0x87e   :  { %v773_v28 = vadd.f32 %v772_v24, %v2020_v36 }
 0x880   :  { %1790 = vtanh.f32 %v773_v28 }
 0x886   :  { %v1791_v31 = vpop.eup %1790 }
 0x887   :  { %v775_v32 = vsub.f32 %v707_v4, %v1791_v31 }
 0x889   :  { %777 = vrot.lane.b32.xlu1 %v775_v32, %s1852_s16 }
 0x8fb   :  { %v778_v37 = vpop.permute.xlu1 %777 }
 0x8fc   :  { %v780_v27 = vmul.f32 %v778_v37, %v769_v23 }
 0x8fe   :  { %782 = vrot.lane.b32.xlu2 %v780_v27, %s1853_s27 }
 0x958   :  { %v783_v38 = vpop.permute.xlu2 %782 }
 0x959   :  { %v785_v42 = vadd.f32 %v1791_v31, %v783_v38 }
 0x95b   :  { %1710 = vmatmul.msk.f32.vlgmr.msra.gmra.mxu0 %vm317_vm2, %v785_v42  ;;  %1711 = vmatmul.msk.f32.vlgmr.msrb.gmra.mxu1 %vm317_vm2, %v785_v42 }
 0x9d8   :  { %v806_v47 = vpop.f32.mrf.mxu0  ;;  %v826_v59 = vpop.f32.mrf.mxu1 }
 0x9d9   :  { %v829_v36 = vadd.f32 %v806_v47, %v128_v43  ;;  %v849_v60 = vadd.f32 %v2029_v48, %v826_v59 }
 0x9db   :  { %v1712_v9 = vmul.f32 -1.442695, %v829_v36 }
 0x9dd   :  { %1792 = vpow2.f32 %v1712_v9 }
 0x9e3   :  { %v1793_v49 = vpop.eup %1792 }
 0x9e4   :  { %v833_v21 = vadd.f32 1.0, %v1793_v49  ;;  %v2208_v49 = vld [vmem:[%s2386_s8] sm:$0xff] }
 0x9e5   :  { %960 = vmatpush.msrb.mxu0 %v2208_v49  ;;  %1038 = vmatpush.msra.mxu2 %v2208_v49 }
 0x9e6   :  { %1794 = vrcp.f32 %v833_v21  ;;  %v845_v57 = vand.u32 2147483648, %v833_v21  ;;  %v843_v5 = vand.u32 2147483647, %v833_v21  ;;  %vm839_vm0 = vweird.f32 %v833_v21 }
 0x9e7   :  { %1116 = vmatpush.msra.mxu0 %v2208_v49 }
 0x9e8   :  { %v846_v14 = vor.u32 1.1754944e-38, %v845_v57  ;;  %vm844_vm3 = vcmp.eq.f32.partialorder %v843_v5, 8.507059e+37 }
 0x9ec   :  { %v1795_v29 = vpop.eup %1794 }
 0x9ed   :  { %v835_v52 = vmul.f32 %v1795_v29, %v833_v21  ;;  %vm840_vm15 = vweird.f32 %v1795_v29  ;;  %v2218_v21 = vld [vmem:[%s2386_s8 + $0x8] sm:$0xff] }
 0x9ee   :  { %vm841_vm1 = vmor %vm839_vm0, %vm840_vm15  ;;  %980 = vmatpush.msra.mxu1 %v2218_v21  ;;  %1058 = vmatpush.msra.mxu3 %v2218_v21 }
 0x9ef   :  { %v836_v53 = vsub.f32 1.0, %v835_v52 }
 0x9f0   :  { %1136 = vmatpush.msrb.mxu1 %v2218_v21 }
 0x9f1   :  { %v837_v58 = vmul.f32 %v1795_v29, %v836_v53  ;;  %v240_v53 = vadd.f32 %v2093_v15, %v2100_v19 }
 0x9f3   :  { %v838_v4 = vadd.f32 %v1795_v29, %v837_v58 }
 0x9f5   :  { %v842_v10 = vsel %vm841_vm1, %v1795_v29, %v838_v4 }
 0x9f6   :  { %v847_v33 = vsel %vm844_vm3, %v846_v14, %v842_v10 }
 0x9f7   :  { %v850_v61 = vmul.f32 %v849_v60, %v847_v33 }
 0x9f9   :  { %v851_v62 = vadd.f32 %v850_v61, %v2022_v40  ;;  %v2233_v61 = vld [vmem:[%s2387_s10] ss:$0 sm:$0xff] }
 0x9fb   :  { %1796 = vtanh.f32 %v851_v62 }
 0xa01   :  { %v1797_v0 = vpop.eup %1796 }
 0xa02   :  { %v853_v1 = vsub.f32 %v785_v42, %v1797_v0 }
 0xa04   :  { %855 = vrot.lane.b32.xlu0 %v853_v1, %s1852_s16 }
 0xa76   :  { %v856_v2 = vpop.permute.xlu0 %855 }
 0xa77   :  { %v858_v3 = vmul.f32 %v856_v2, %v847_v33 }
 0xa79   :  { %860 = vrot.lane.b32.xlu1 %v858_v3, %s1853_s27 }
 0xaeb   :  { %v861_v6 = vpop.permute.xlu1 %860 }
 0xaec   :  { %v863_v13 = vadd.f32 %v1797_v0, %v861_v6 }
 0xaee   :  { %1713 = vmatmul.msk.f32.vlgmr.msrb.gmra.mxu2 %vm317_vm2, %v863_v13  ;;  %1714 = vmatmul.msk.f32.vlgmr.msrb.gmra.mxu3 %vm317_vm2, %v863_v13 }
 0xaef   :  { %1194 = vmatpush.msrb.mxu2 %v2208_v49  ;;  %1214 = vmatpush.msrb.mxu3 %v2218_v21 }
 0xb71   :  { %v884_v8 = vpop.f32.mrf.mxu2  ;;  %v904_v37 = vpop.f32.mrf.mxu3 }
 0xb72   :  { %v907_v40 = vadd.f32 %v884_v8, %v131_v7  ;;  %v927_v12 = vadd.f32 %v2029_v48, %v904_v37  ;;  %v281_v7 = vadd.f32 %v2095_v16, %v2102_v20 }
 0xb74   :  { %v1715_v18 = vmul.f32 -1.442695, %v907_v40 }
 0xb76   :  { %1798 = vpow2.f32 %v1715_v18 }
 0xb7c   :  { %v1799_v30 = vpop.eup %1798 }
 0xb7d   :  { %v911_v11 = vadd.f32 1.0, %v1799_v30 }
 0xb7f   :  { %1800 = vrcp.f32 %v911_v11  ;;  %v923_v28 = vand.u32 2147483648, %v911_v11  ;;  %v921_v32 = vand.u32 2147483647, %v911_v11  ;;  %vm917_vm5 = vweird.f32 %v911_v11 }
 0xb81   :  { %v924_v38 = vor.u32 1.1754944e-38, %v923_v28  ;;  %vm922_vm7 = vcmp.eq.f32.partialorder %v921_v32, 8.507059e+37 }
 0xb85   :  { %v1801_v17 = vpop.eup %1800 }
 0xb86   :  { %v913_v23 = vmul.f32 %v1801_v17, %v911_v11  ;;  %vm918_vm4 = vweird.f32 %v1801_v17 }
 0xb87   :  { %vm919_vm6 = vmor %vm917_vm5, %vm918_vm4 }
 0xb88   :  { %v914_v24 = vsub.f32 1.0, %v913_v23 }
 0xb8a   :  { %v915_v31 = vmul.f32 %v1801_v17, %v914_v24 }
 0xb8c   :  { %v916_v27 = vadd.f32 %v1801_v17, %v915_v31 }
 0xb8e   :  { %v920_v22 = vsel %vm919_vm6, %v1801_v17, %v916_v27 }
 0xb8f   :  { %v925_v42 = vsel %vm922_vm7, %v924_v38, %v920_v22 }
 0xb90   :  { %v928_v43 = vmul.f32 %v927_v12, %v925_v42 }
 0xb92   :  { %v929_v47 = vadd.f32 %v928_v43, %v2024_v44 }
 0xb94   :  { %1802 = vtanh.f32 %v929_v47 }
 0xb9a   :  { %v1803_v36 = vpop.eup %1802 }
 0xb9b   :  { %v931_v9 = vsub.f32 %v863_v13, %v1803_v36 }
 0xb9d   :  { %933 = vrot.lane.b32.xlu2 %v931_v9, %s1852_s16 }
 0xbf7   :  { %v934_v48 = vpop.permute.xlu2 %933 }
 0xbf8   :  { %v936_v44 = vmul.f32 %v934_v48, %v925_v42 }
 0xbfa   :  { %938 = vrot.lane.b32.xlu0 %v936_v44, %s1853_s27 }
 0xc6c   :  { %v939_v29 = vpop.permute.xlu0 %938 }
 0xc6d   :  { %v941_v52 = vadd.f32 %v1803_v36, %v939_v29 }
 0xc6f   :  { %1716 = vmatmul.msk.f32.vlgmr.msrb.gmra.mxu0 %vm317_vm2, %v941_v52  ;;  %1717 = vmatmul.msk.f32.vlgmr.msra.gmra.mxu1 %vm317_vm2, %v941_v52 }
 0xc70   :  { %1272 = vmatpush.msrb.mxu0 %v2208_v49  ;;  %1292 = vmatpush.msra.mxu1 %v2218_v21 }
 0xcec   :  { %v962_v57 = vpop.f32.mrf.mxu0  ;;  %v982_v15 = vpop.f32.mrf.mxu1 }
 0xced   :  { %v985_v58 = vadd.f32 %v962_v57, %v240_v53  ;;  %v1005_v6 = vadd.f32 %v2233_v61, %v982_v15 }
 0xcef   :  { %v1718_v5 = vmul.f32 -1.442695, %v985_v58 }
 0xcf1   :  { %1804 = vpow2.f32 %v1718_v5 }
 0xcf7   :  { %v1805_v59 = vpop.eup %1804 }
 0xcf8   :  { %v989_v4 = vadd.f32 1.0, %v1805_v59 }
 0xcfa   :  { %1806 = vrcp.f32 %v989_v4  ;;  %v1001_v33 = vand.u32 2147483648, %v989_v4  ;;  %v999_v0 = vand.u32 2147483647, %v989_v4  ;;  %vm995_vm10 = vweird.f32 %v989_v4 }
 0xcfc   :  { %v1002_v2 = vor.u32 1.1754944e-38, %v1001_v33  ;;  %vm1000_vm12 = vcmp.eq.f32.partialorder %v999_v0, 8.507059e+37 }
 0xd00   :  { %v1807_v14 = vpop.eup %1806 }
 0xd01   :  { %v991_v10 = vmul.f32 %v1807_v14, %v989_v4  ;;  %vm996_vm9 = vweird.f32 %v1807_v14 }
 0xd02   :  { %vm997_vm11 = vmor %vm995_vm10, %vm996_vm9 }
 0xd03   :  { %v992_v60 = vsub.f32 1.0, %v991_v10 }
 0xd05   :  { %v993_v62 = vmul.f32 %v1807_v14, %v992_v60 }
 0xd07   :  { %v994_v1 = vadd.f32 %v1807_v14, %v993_v62 }
 0xd09   :  { %v998_v3 = vsel %vm997_vm11, %v1807_v14, %v994_v1 }
 0xd0a   :  { %v1003_v13 = vsel %vm1000_vm12, %v1002_v2, %v998_v3 }
 0xd0b   :  { %v1006_v8 = vmul.f32 %v1005_v6, %v1003_v13 }
 0xd0d   :  { %v1007_v40 = vadd.f32 %v1006_v8, %v281_v7 }
 0xd0f   :  { %1808 = vtanh.f32 %v1007_v40 }
 0xd15   :  { %v1809_v18 = vpop.eup %1808 }
 0xd16   :  { %v1009_v30 = vsub.f32 %v941_v52, %v1809_v18 }
 0xd18   :  { %1011 = vrot.lane.b32.xlu1 %v1009_v30, %s1852_s16 }
 0xd8a   :  { %v1012_v11 = vpop.permute.xlu1 %1011 }
 0xd8b   :  { %v1014_v17 = vmul.f32 %v1012_v11, %v1003_v13 }
 0xd8d   :  { %1016 = vrot.lane.b32.xlu2 %v1014_v17, %s1853_s27 }
 0xde7   :  { %v1017_v23 = vpop.permute.xlu2 %1016 }
 0xde8   :  { %v2240_v24 = vadd.f32 %v1809_v18, %v1017_v23 }
 0xdea   :  { %1719 = vmatmul.msk.f32.vlgmr.msra.gmra.mxu2 %vm317_vm2, %v2240_v24  ;;  %1720 = vmatmul.msk.f32.vlgmr.msra.gmra.mxu3 %vm317_vm2, %v2240_v24 }
 0xdeb   :  { %1350 = vmatpush.msra.mxu2 %v2208_v49  ;;  %1370 = vmatpush.msra.mxu3 %v2218_v21 }
 0xe6d   :  { %v1040_v16 = vpop.f32.mrf.mxu2  ;;  %v1060_v47 = vpop.f32.mrf.mxu3 }
 0xe6e   :  { %v1063_v28 = vadd.f32 %v1040_v16, %v2105_v25  ;;  %v1083_v25 = vadd.f32 %v2233_v61, %v1060_v47 }
 0xe70   :  { %v1721_v31 = vmul.f32 -1.442695, %v1063_v28 }
 0xe72   :  { %1810 = vpow2.f32 %v1721_v31 }
 0xe78   :  { %v1811_v32 = vpop.eup %1810 }
 0xe79   :  { %v1067_v37 = vadd.f32 1.0, %v1811_v32 }
 0xe7b   :  { %1812 = vrcp.f32 %v1067_v37  ;;  %v1079_v12 = vand.u32 2147483648, %v1067_v37  ;;  %v1077_v43 = vand.u32 2147483647, %v1067_v37  ;;  %vm1073_vm14 = vweird.f32 %v1067_v37 }
 0xe7d   :  { %v1080_v9 = vor.u32 1.1754944e-38, %v1079_v12  ;;  %vm1078_vm0 = vcmp.eq.f32.partialorder %v1077_v43, 8.507059e+37 }
 0xe81   :  { %v1813_v27 = vpop.eup %1812 }
 0xe82   :  { %v1069_v38 = vmul.f32 %v1813_v27, %v1067_v37  ;;  %vm1074_vm13 = vweird.f32 %v1813_v27 }
 0xe83   :  { %vm1075_vm15 = vmor %vm1073_vm14, %vm1074_vm13 }
 0xe84   :  { %v1070_v22 = vsub.f32 1.0, %v1069_v38 }
 0xe86   :  { %v1071_v42 = vmul.f32 %v1813_v27, %v1070_v22 }
 0xe88   :  { %v1072_v36 = vadd.f32 %v1813_v27, %v1071_v42 }
 0xe8a   :  { %v1076_v48 = vsel %vm1075_vm15, %v1813_v27, %v1072_v36 }
 0xe8b   :  { %v1081_v44 = vsel %vm1078_vm0, %v1080_v9, %v1076_v48 }
 0xe8c   :  { %v1084_v29 = vmul.f32 %v1083_v25, %v1081_v44 }
 0xe8e   :  { %v1085_v52 = vadd.f32 %v1084_v29, %v2108_v26 }
 0xe90   :  { %1814 = vtanh.f32 %v1085_v52 }
 0xe96   :  { %v1815_v53 = vpop.eup %1814 }
 0xe97   :  { %v1087_v57 = vsub.f32 %v2240_v24, %v1815_v53 }
 0xe99   :  { %1089 = vrot.lane.b32.xlu0 %v1087_v57, %s1852_s16 }
 0xf0b   :  { %v1090_v58 = vpop.permute.xlu0 %1089 }
 0xf0c   :  { %v1092_v5 = vmul.f32 %v1090_v58, %v1081_v44 }
 0xf0e   :  { %1094 = vrot.lane.b32.xlu1 %v1092_v5, %s1853_s27 }
 0xf80   :  { %v1095_v59 = vpop.permute.xlu1 %1094 }
 0xf81   :  { %v2254_v4 = vadd.f32 %v1815_v53, %v1095_v59 }
 0xf83   :  { %1722 = vmatmul.msk.f32.vlgmr.msra.gmra.mxu0 %vm317_vm2, %v2254_v4  ;;  %1723 = vmatmul.msk.f32.vlgmr.msrb.gmra.mxu1 %vm317_vm2, %v2254_v4 }
 0xf84   :  { %1428 = vmatpush.msra.mxu0 %v2208_v49  ;;  %1448 = vmatpush.msrb.mxu1 %v2218_v21 }
0x1000   :  { %v1118_v26 = vpop.f32.mrf.mxu0  ;;  %v1138_v6 = vpop.f32.mrf.mxu1 }
0x1001   :  { %v1141_v14 = vadd.f32 %v1118_v26, %v2113_v34  ;;  %v1161_v34 = vadd.f32 %v2233_v61, %v1138_v6 }
0x1003   :  { %v1724_v10 = vmul.f32 -1.442695, %v1141_v14 }
0x1005   :  { %1816 = vpow2.f32 %v1724_v10 }
0x100b   :  { %v1817_v60 = vpop.eup %1816 }
0x100c   :  { %v1145_v33 = vadd.f32 1.0, %v1817_v60 }
0x100e   :  { %1818 = vrcp.f32 %v1145_v33  ;;  %v1157_v1 = vand.u32 2147483648, %v1145_v33  ;;  %v1155_v3 = vand.u32 2147483647, %v1145_v33  ;;  %vm1151_vm3 = vweird.f32 %v1145_v33 }
0x1010   :  { %v1158_v7 = vor.u32 1.1754944e-38, %v1157_v1  ;;  %vm1156_vm5 = vcmp.eq.f32.partialorder %v1155_v3, 8.507059e+37 }
0x1014   :  { %v1819_v62 = vpop.eup %1818 }
0x1015   :  { %v1147_v0 = vmul.f32 %v1819_v62, %v1145_v33  ;;  %vm1152_vm1 = vweird.f32 %v1819_v62 }
0x1016   :  { %vm1153_vm4 = vmor %vm1151_vm3, %vm1152_vm1 }
0x1017   :  { %v1148_v15 = vsub.f32 1.0, %v1147_v0 }
0x1019   :  { %v1149_v2 = vmul.f32 %v1819_v62, %v1148_v15 }
0x101b   :  { %v1150_v13 = vadd.f32 %v1819_v62, %v1149_v2 }
0x101d   :  { %v1154_v8 = vsel %vm1153_vm4, %v1819_v62, %v1150_v13 }
0x101e   :  { %v1159_v40 = vsel %vm1156_vm5, %v1158_v7, %v1154_v8 }
0x101f   :  { %v1162_v18 = vmul.f32 %v1161_v34, %v1159_v40 }
0x1021   :  { %v1163_v30 = vadd.f32 %v1162_v18, %v2116_v35 }
0x1023   :  { %1820 = vtanh.f32 %v1163_v30 }
0x1029   :  { %v1821_v11 = vpop.eup %1820 }
0x102a   :  { %v1165_v17 = vsub.f32 %v2254_v4, %v1821_v11 }
0x102c   :  { %1167 = vrot.lane.b32.xlu2 %v1165_v17, %s1852_s16 }
0x1086   :  { %v1168_v23 = vpop.permute.xlu2 %1167 }
0x1087   :  { %v1170_v16 = vmul.f32 %v1168_v23, %v1159_v40 }
0x1089   :  { %1172 = vrot.lane.b32.xlu0 %v1170_v16, %s1853_s27 }
0x10fb   :  { %v1173_v28 = vpop.permute.xlu0 %1172 }
0x10fc   :  { %v2268_v31 = vadd.f32 %v1821_v11, %v1173_v28 }
0x10fe   :  { %1725 = vmatmul.msk.f32.vlgmr.msrb.gmra.mxu2 %vm317_vm2, %v2268_v31  ;;  %1726 = vmatmul.msk.f32.vlgmr.msrb.gmra.mxu3 %vm317_vm2, %v2268_v31 }
0x10ff   :  { %1506 = vmatpush.msrb.mxu2 %v2208_v49  ;;  %1526 = vmatpush.msrb.mxu3 %v2218_v21 }
0x1181   :  { %v1196_v35 = vpop.f32.mrf.mxu2  ;;  %v1216_v9 = vpop.f32.mrf.mxu3 }
0x1182   :  { %v1219_v32 = vadd.f32 %v1196_v35, %v2121_v39  ;;  %v1239_v39 = vadd.f32 %v2233_v61, %v1216_v9 }
0x1184   :  { %v1727_v37 = vmul.f32 -1.442695, %v1219_v32 }
0x1186   :  { %1822 = vpow2.f32 %v1727_v37 }
0x118c   :  { %v1823_v27 = vpop.eup %1822 }
0x118d   :  { %v1223_v38 = vadd.f32 1.0, %v1823_v27 }
0x118f   :  { %1824 = vrcp.f32 %v1223_v38  ;;  %v1235_v43 = vand.u32 2147483648, %v1223_v38  ;;  %v1233_v36 = vand.u32 2147483647, %v1223_v38  ;;  %vm1229_vm7 = vweird.f32 %v1223_v38 }
0x1191   :  { %v1236_v49 = vor.u32 1.1754944e-38, %v1235_v43  ;;  %vm1234_vm10 = vcmp.eq.f32.partialorder %v1233_v36, 8.507059e+37 }
0x1195   :  { %v1825_v22 = vpop.eup %1824 }
0x1196   :  { %v1225_v12 = vmul.f32 %v1825_v22, %v1223_v38  ;;  %vm1230_vm6 = vweird.f32 %v1825_v22 }
0x1197   :  { %vm1231_vm9 = vmor %vm1229_vm7, %vm1230_vm6 }
0x1198   :  { %v1226_v42 = vsub.f32 1.0, %v1225_v12 }
0x119a   :  { %v1227_v47 = vmul.f32 %v1825_v22, %v1226_v42 }
0x119c   :  { %v1228_v48 = vadd.f32 %v1825_v22, %v1227_v47 }
0x119e   :  { %v1232_v21 = vsel %vm1231_vm9, %v1825_v22, %v1228_v48 }
0x119f   :  { %v1237_v25 = vsel %vm1234_vm10, %v1236_v49, %v1232_v21 }
0x11a0   :  { %v1240_v44 = vmul.f32 %v1239_v39, %v1237_v25 }
0x11a2   :  { %v1241_v29 = vadd.f32 %v1240_v44, %v2124_v41 }
0x11a4   :  { %1826 = vtanh.f32 %v1241_v29 }
0x11aa   :  { %v1827_v52 = vpop.eup %1826 }
0x11ab   :  { %v1243_v53 = vsub.f32 %v2268_v31, %v1827_v52 }
0x11ad   :  { %1245 = vrot.lane.b32.xlu1 %v1243_v53, %s1852_s16  ;;  %v1574_v53 = vld [vmem:[%s2388_s11] sm:$0xff] }
0x121f   :  { %v1246_v57 = vpop.permute.xlu1 %1245 }
0x1220   :  { %v1248_v58 = vmul.f32 %v1246_v57, %v1237_v25 }
0x1222   :  { %1250 = vrot.lane.b32.xlu2 %v1248_v58, %s1853_s27 }
0x127c   :  { %v1251_v5 = vpop.permute.xlu2 %1250 }
0x127d   :  { %v2282_v59 = vadd.f32 %v1827_v52, %v1251_v5  ;;  %v1567_v5 = vmax.f32 %v2254_v4, 0.0 }
0x127f   :  { %1728 = vmatmul.msk.f32.vlgmr.msrb.gmra.mxu0 %vm317_vm2, %v2282_v59  ;;  %1729 = vmatmul.msk.f32.vlgmr.msra.gmra.mxu1 %vm317_vm2, %v2282_v59 }
0x1280   :  { %1618 = vmatpush.msrb.mxu0 %v1574_v53 }
0x12fc   :  { %v1274_v41 = vpop.f32.mrf.mxu0  ;;  %v1294_v3 = vpop.f32.mrf.mxu1 }
0x12fd   :  { %v1297_v26 = vadd.f32 %v1274_v41, %v2127_v45  ;;  %v1317_v45 = vadd.f32 %v2233_v61, %v1294_v3  ;;  %v1568_v41 = vmax.f32 %v2268_v31, 0.0  ;;  %v2320_v31 = vld [vmem:[%s2389_s12] ss:$0 sm:$0xff] }
0x12ff   :  { %v1730_v14 = vmul.f32 -1.442695, %v1297_v26  ;;  %v1569_v26 = vmax.f32 %v2282_v59, 0.0 }
0x1301   :  { %1828 = vpow2.f32 %v1730_v14 }
0x1307   :  { %v1829_v10 = vpop.eup %1828 }
0x1308   :  { %v1301_v60 = vadd.f32 1.0, %v1829_v10 }
0x130a   :  { %1830 = vrcp.f32 %v1301_v60  ;;  %v1313_v15 = vand.u32 2147483648, %v1301_v60  ;;  %v1311_v2 = vand.u32 2147483647, %v1301_v60  ;;  %vm1307_vm12 = vweird.f32 %v1301_v60 }
0x130c   :  { %v1314_v13 = vor.u32 1.1754944e-38, %v1313_v15  ;;  %vm1312_vm14 = vcmp.eq.f32.partialorder %v1311_v2, 8.507059e+37 }
0x1310   :  { %v1831_v33 = vpop.eup %1830 }
0x1311   :  { %v1303_v62 = vmul.f32 %v1831_v33, %v1301_v60  ;;  %vm1308_vm11 = vweird.f32 %v1831_v33 }
0x1312   :  { %vm1309_vm13 = vmor %vm1307_vm12, %vm1308_vm11 }
0x1313   :  { %v1304_v0 = vsub.f32 1.0, %v1303_v62 }
0x1315   :  { %v1305_v1 = vmul.f32 %v1831_v33, %v1304_v0 }
0x1317   :  { %v1306_v6 = vadd.f32 %v1831_v33, %v1305_v1 }
0x1319   :  { %v1310_v7 = vsel %vm1309_vm13, %v1831_v33, %v1306_v6 }
0x131a   :  { %v1315_v8 = vsel %vm1312_vm14, %v1314_v13, %v1310_v7 }
0x131b   :  { %v1318_v34 = vmul.f32 %v1317_v45, %v1315_v8 }
0x131d   :  { %v1319_v40 = vadd.f32 %v1318_v34, %v2130_v46 }
0x131f   :  { %1832 = vtanh.f32 %v1319_v40 }
0x1325   :  { %v1833_v18 = vpop.eup %1832 }
0x1326   :  { %v1321_v30 = vsub.f32 %v2282_v59, %v1833_v18 }
0x1328   :  { %1323 = vrot.lane.b32.xlu0 %v1321_v30, %s1852_s16 }
0x139a   :  { %v1324_v11 = vpop.permute.xlu0 %1323 }
0x139b   :  { %v1326_v17 = vmul.f32 %v1324_v11, %v1315_v8 }
0x139d   :  { %1328 = vrot.lane.b32.xlu1 %v1326_v17, %s1853_s27 }
0x140f   :  { %v1329_v23 = vpop.permute.xlu1 %1328 }
0x1410   :  { %v1331_v16 = vadd.f32 %v1833_v18, %v1329_v23 }
0x1412   :  { %1731 = vmatmul.msk.f32.vlgmr.msra.gmra.mxu2 %vm317_vm2, %v1331_v16  ;;  %1732 = vmatmul.msk.f32.vlgmr.msra.gmra.mxu3 %vm317_vm2, %v1331_v16  ;;  %v1570_v14 = vmax.f32 %v1331_v16, 0.0 }
0x1495   :  { %v1352_v28 = vpop.f32.mrf.mxu2  ;;  %v1372_v47 = vpop.f32.mrf.mxu3 }
0x1496   :  { %v1375_v35 = vadd.f32 %v1352_v28, %v2133_v50  ;;  %v1395_v50 = vadd.f32 %v2233_v61, %v1372_v47 }
0x1498   :  { %v1733_v46 = vmul.f32 -1.442695, %v1375_v35 }
0x149a   :  { %1834 = vpow2.f32 %v1733_v46 }
0x14a0   :  { %v1835_v32 = vpop.eup %1834 }
0x14a1   :  { %v1379_v37 = vadd.f32 1.0, %v1835_v32 }
0x14a3   :  { %1836 = vrcp.f32 %v1379_v37  ;;  %v1391_v12 = vand.u32 2147483648, %v1379_v37  ;;  %v1389_v43 = vand.u32 2147483647, %v1379_v37  ;;  %vm1385_vm0 = vweird.f32 %v1379_v37 }
0x14a5   :  { %v1392_v9 = vor.u32 1.1754944e-38, %v1391_v12  ;;  %vm1390_vm3 = vcmp.eq.f32.partialorder %v1389_v43, 8.507059e+37 }
0x14a9   :  { %v1837_v27 = vpop.eup %1836 }
0x14aa   :  { %v1381_v38 = vmul.f32 %v1837_v27, %v1379_v37  ;;  %vm1386_vm15 = vweird.f32 %v1837_v27 }
0x14ab   :  { %vm1387_vm1 = vmor %vm1385_vm0, %vm1386_vm15 }
0x14ac   :  { %v1382_v22 = vsub.f32 1.0, %v1381_v38 }
0x14ae   :  { %v1383_v42 = vmul.f32 %v1837_v27, %v1382_v22 }
0x14b0   :  { %v1384_v36 = vadd.f32 %v1837_v27, %v1383_v42 }
0x14b2   :  { %v1388_v48 = vsel %vm1387_vm1, %v1837_v27, %v1384_v36 }
0x14b3   :  { %v1393_v49 = vsel %vm1390_vm3, %v1392_v9, %v1388_v48  ;;  %v261_v48 = vadd.f32 %v2144_v56, %v2100_v19 }
0x14b4   :  { %v1396_v21 = vmul.f32 %v1395_v50, %v1393_v49 }
0x14b6   :  { %v1397_v39 = vadd.f32 %v1396_v21, %v2136_v51  ;;  %v1566_v51 = vmax.f32 %v2240_v24, 0.0 }
0x14b8   :  { %1838 = vtanh.f32 %v1397_v39 }
0x14be   :  { %v1839_v25 = vpop.eup %1838 }
0x14bf   :  { %v1399_v44 = vsub.f32 %v1331_v16, %v1839_v25 }
0x14c1   :  { %1401 = vrot.lane.b32.xlu2 %v1399_v44, %s1852_s16 }
0x151b   :  { %v1402_v29 = vpop.permute.xlu2 %1401 }
0x151c   :  { %v1404_v52 = vmul.f32 %v1402_v29, %v1393_v49 }
0x151e   :  { %1406 = vrot.lane.b32.xlu0 %v1404_v52, %s1853_s27 }
0x1590   :  { %v1407_v57 = vpop.permute.xlu0 %1406 }
0x1591   :  { %v1409_v58 = vadd.f32 %v1839_v25, %v1407_v57 }
0x1593   :  { %1734 = vmatmul.msk.f32.vlgmr.msra.gmra.mxu0 %vm317_vm2, %v1409_v58  ;;  %1735 = vmatmul.msk.f32.vlgmr.msrb.gmra.mxu1 %vm317_vm2, %v1409_v58  ;;  %v1571_v10 = vmax.f32 %v1409_v58, 0.0 }
0x159b   :  { %1740 = vmatmul.msk.f32.vlgmr.msrb.gmra.mxu0 %vm317_vm2, %v1566_v51 }
0x15a3   :  { %1741 = vmatmul.msk.f32.gmra.mxu0 %vm317_vm2, %v1567_v5 }
0x15ab   :  { %1742 = vmatmul.msk.f32.gmra.mxu0 %vm317_vm2, %v1568_v41 }
0x15b3   :  { %1743 = vmatmul.msk.f32.gmra.mxu0 %vm317_vm2, %v1569_v26 }
0x15bb   :  { %1744 = vmatmul.msk.f32.gmra.mxu0 %vm317_vm2, %v1570_v14  ;;  %v302_v14 = vadd.f32 %v2148_v63, %v2102_v20 }
0x15c3   :  { %1745 = vmatmul.msk.f32.gmra.mxu0 %vm317_vm2, %v1571_v10 }
0x1610   :  { %v1430_v24 = vpop.f32.mrf.mxu0  ;;  %v1450_v34 = vpop.f32.mrf.mxu1 }
0x1611   :  { %v1453_v60 = vadd.f32 %v1430_v24, %v2139_v54  ;;  %v1473_v11 = vadd.f32 %v2233_v61, %v1450_v34 }
0x1613   :  { %v1736_v4 = vmul.f32 -1.442695, %v1453_v60 }
0x1615   :  { %1840 = vpow2.f32 %v1736_v4 }
0x1618   :  { %v1620_v33 = vpop.f32.mrf.mxu0 }
0x1619   :  { %v1621_v59 = vadd.f32 %v2320_v31, %v1620_v33 }
0x161b   :  { %v1841_v62 = vpop.eup %1840  ;;  %1644 = vst.msk [vmem:[%s2390_s13] sm:$0xff] %vm190_vm8, %v1621_v59 }
0x161c   :  { %v1457_v0 = vadd.f32 1.0, %v1841_v62 }
0x161e   :  { %1842 = vrcp.f32 %v1457_v0  ;;  %v1469_v6 = vand.u32 2147483648, %v1457_v0  ;;  %v1467_v45 = vand.u32 2147483647, %v1457_v0  ;;  %vm1463_vm5 = vweird.f32 %v1457_v0 }
0x1620   :  { %v1623_v15 = vpop.f32.mrf.mxu0  ;;  %v1470_v18 = vor.u32 1.1754944e-38, %v1469_v6  ;;  %vm1468_vm7 = vcmp.eq.f32.partialorder %v1467_v45, 8.507059e+37 }
0x1621   :  { %v1624_v54 = vadd.f32 %v2320_v31, %v1623_v15 }
0x1623   :  { %1645 = vst.msk [vmem:[%s2390_s13 + $0x8] sm:$0xff] %vm190_vm8, %v1624_v54 }
0x1624   :  { %v1843_v1 = vpop.eup %1842 }
0x1625   :  { %v1459_v2 = vmul.f32 %v1843_v1, %v1457_v0  ;;  %vm1464_vm4 = vweird.f32 %v1843_v1 }
0x1626   :  { %vm1465_vm6 = vmor %vm1463_vm5, %vm1464_vm4 }
0x1627   :  { %v1460_v3 = vsub.f32 1.0, %v1459_v2 }
0x1628   :  { %v1626_v13 = vpop.f32.mrf.mxu0 }
0x1629   :  { %v1461_v7 = vmul.f32 %v1843_v1, %v1460_v3  ;;  %v1627_v8 = vadd.f32 %v2320_v31, %v1626_v13 }
0x162b   :  { %v1462_v40 = vadd.f32 %v1843_v1, %v1461_v7  ;;  %1646 = vst.msk [vmem:[%s2390_s13 + $0x10] sm:$0xff] %vm190_vm8, %v1627_v8 }
0x162d   :  { %v1466_v30 = vsel %vm1465_vm6, %v1843_v1, %v1462_v40 }
0x162e   :  { %v1471_v17 = vsel %vm1468_vm7, %v1470_v18, %v1466_v30 }
0x162f   :  { %v1474_v23 = vmul.f32 %v1473_v11, %v1471_v17 }
0x1630   :  { %v1629_v16 = vpop.f32.mrf.mxu0 }
0x1631   :  { %v1475_v28 = vadd.f32 %v1474_v23, %v2142_v55  ;;  %v1630_v35 = vadd.f32 %v2320_v31, %v1629_v16 }
0x1633   :  { %1844 = vtanh.f32 %v1475_v28  ;;  %1647 = vst.msk [vmem:[%s2390_s13 + $0x18] sm:$0xff] %vm190_vm8, %v1630_v35 }
0x1638   :  { %v1632_v46 = vpop.f32.mrf.mxu0 }
0x1639   :  { %v1845_v32 = vpop.eup %1844  ;;  %v1633_v37 = vadd.f32 %v2320_v31, %v1632_v46 }
0x163a   :  { %v1477_v27 = vsub.f32 %v1409_v58, %v1845_v32 }
0x163b   :  { %1648 = vst.msk [vmem:[%s2390_s13 + $0x20] sm:$0xff] %vm190_vm8, %v1633_v37 }
0x163c   :  { %1479 = vrot.lane.b32.xlu1 %v1477_v27, %s1852_s16 }
0x1640   :  { %v1635_v55 = vpop.f32.mrf.mxu0 }
0x1641   :  { %v1636_v38 = vadd.f32 %v2320_v31, %v1635_v55 }
0x1643   :  { %1649 = vst.msk [vmem:[%s2390_s13 + $0x28] sm:$0xff] %vm190_vm8, %v1636_v38 }
0x16ae   :  { %v1480_v22 = vpop.permute.xlu1 %1479 }
0x16af   :  { %v1482_v12 = vmul.f32 %v1480_v22, %v1471_v17 }
0x16b1   :  { %1484 = vrot.lane.b32.xlu2 %v1482_v12, %s1853_s27 }
0x170b   :  { %v1485_v42 = vpop.permute.xlu2 %1484 }
0x170c   :  { %v1487_v43 = vadd.f32 %v1845_v32, %v1485_v42 }
0x170e   :  { %1737 = vmatmul.msk.f32.vlgmr.msrb.gmra.mxu2 %vm317_vm2, %v1487_v43  ;;  %1738 = vmatmul.msk.f32.vlgmr.msrb.gmra.mxu3 %vm317_vm2, %v1487_v43  ;;  %v1572_v47 = vmax.f32 %v1487_v43, 0.0 }
0x1710   :  { %1746 = vmatmul.msk.f32.gmra.mxu0 %vm317_vm2, %v1572_v47 }
0x178d   :  { %v1638_v36 = vpop.f32.mrf.mxu0 }
0x178e   :  { %v1639_v9 = vadd.f32 %v2320_v31, %v1638_v36 }
0x1790   :  { %1650 = vst.msk [vmem:[%s2390_s13 + $0x30] sm:$0xff] %vm190_vm8, %v1639_v9 }
0x1791   :  { %v1508_v50 = vpop.f32.mrf.mxu2  ;;  %v1528_v19 = vpop.f32.mrf.mxu3 }
0x1792   :  { %v1531_v49 = vadd.f32 %v1508_v50, %v261_v48  ;;  %v1551_v41 = vadd.f32 %v2233_v61, %v1528_v19 }
0x1794   :  { %v1739_v21 = vmul.f32 -1.442695, %v1531_v49 }
0x1796   :  { %1846 = vpow2.f32 %v1739_v21 }
0x179c   :  { %v1847_v39 = vpop.eup %1846 }
0x179d   :  { %v1535_v25 = vadd.f32 1.0, %v1847_v39 }
0x179f   :  { %1848 = vrcp.f32 %v1535_v25  ;;  %v1547_v53 = vand.u32 2147483648, %v1535_v25  ;;  %v1545_v58 = vand.u32 2147483647, %v1535_v25  ;;  %vm1541_vm10 = vweird.f32 %v1535_v25 }
0x17a1   :  { %v1548_v51 = vor.u32 1.1754944e-38, %v1547_v53  ;;  %vm1546_vm12 = vcmp.eq.f32.partialorder %v1545_v58, 8.507059e+37 }
0x17a5   :  { %v1849_v44 = vpop.eup %1848 }
0x17a6   :  { %v1537_v29 = vmul.f32 %v1849_v44, %v1535_v25  ;;  %vm1542_vm9 = vweird.f32 %v1849_v44 }
0x17a7   :  { %vm1543_vm11 = vmor %vm1541_vm10, %vm1542_vm9 }
0x17a8   :  { %v1538_v52 = vsub.f32 1.0, %v1537_v29 }
0x17aa   :  { %v1539_v57 = vmul.f32 %v1849_v44, %v1538_v52 }
0x17ac   :  { %v1540_v56 = vadd.f32 %v1849_v44, %v1539_v57 }
0x17ae   :  { %v1544_v5 = vsel %vm1543_vm11, %v1849_v44, %v1540_v56 }
0x17af   :  { %v1549_v26 = vsel %vm1546_vm12, %v1548_v51, %v1544_v5 }
0x17b0   :  { %v1552_v10 = vmul.f32 %v1551_v41, %v1549_v26 }
0x17b2   :  { %v1553_v24 = vadd.f32 %v1552_v10, %v302_v14 }
0x17b4   :  { %1850 = vtanh.f32 %v1553_v24 }
0x17ba   :  { %v1851_v60 = vpop.eup %1850 }
0x17bb   :  { %v1555_v4 = vsub.f32 %v1487_v43, %v1851_v60 }
0x17bd   :  { %1557 = vrot.lane.b32.xlu0 %v1555_v4, %s1852_s16 }
0x182f   :  { %v1558_v33 = vpop.permute.xlu0 %1557 }
0x1830   :  { %v1560_v59 = vmul.f32 %v1558_v33, %v1549_v26 }
0x1832   :  { %1562 = vrot.lane.b32.xlu1 %v1560_v59, %s1853_s27 }
0x18a4   :  { %v1563_v62 = vpop.permute.xlu1 %1562 }
0x18a5   :  { %v1565_v0 = vadd.f32 %v1851_v60, %v1563_v62 }
0x18a7   :  { %v1573_v15 = vmax.f32 %v1565_v0, 0.0 }
0x18a9   :  { %1747 = vmatmul.msk.f32.gmra.mxu0 %vm317_vm2, %v1573_v15 }
0x1926   :  { %v1641_v61 = vpop.f32.mrf.mxu0 }
0x1927   :  { %v1642_v54 = vadd.f32 %v2320_v31, %v1641_v61 }
0x1929   :  { %1651 = vst.msk [vmem:[%s2390_s13 + $0x38] sm:$0xff] %vm190_vm8, %v1642_v54 }

</bundles_post_ra>
